<compile_context>
chip_gen: v5e
topology: v5e:2x2
jax: 0.10.0
libtpu: 0.0.40
codegen_flags: <defaults>
</compile_context>

<pallas_src>
import functools

import jax
import jax.numpy as jnp
from jax.experimental import pallas as pl
from jax.experimental.pallas import tpu as pltpu


# ----------------------------------------------------------------------------- utils
def _round_up(x, m):
    return ((x + m - 1) // m) * m


def _vmem_limit_bytes():
    """Per-generation scoped-VMEM request: ~75% of physical, capped at 100 MiB.

    v7x (64 MiB physical) -> 48 MiB; v5e/v6e (128 MiB) -> 96 MiB. Falls back to
    the conservative 48 MiB if the hardware query is unavailable."""
    cap = None
    try:
        info = pltpu.get_tpu_info()
        cap = getattr(info, "vmem_capacity_bytes", None)
    except Exception:
        cap = None
    if not cap:
        cap = 64 * 1024 * 1024
    return int(min((int(cap) * 3) // 4, 100 * 1024 * 1024))


def _is_v5e():
    try:
        kind = jax.devices()[0].device_kind.lower()
    except Exception:
        return False
    return ("v5 lite" in kind) or ("v5e" in kind) or ("v5litepod" in kind)


def _derive_batch_block(B, row_in_bytes, row_out_bytes, const_bytes, vmem_limit):
    """Largest batch block keeping double-buffered x/out blocks + constants under
    ~50% of the VMEM budget, while forcing >= 4 grid steps for large B (DMA
    pipelining and v7x dual-TensorCore sharding)."""
    budget = max(int(vmem_limit * 0.5) - const_bytes, 2 * 1024 * 1024)
    per_row = 2 * row_in_bytes + 2 * row_out_bytes          # double-buffered in & out
    cap = max(8, (budget // per_row) // 8 * 8)              # multiple of 8 sublanes
    if B >= 128:
        bb = min(cap, max(64, _round_up(-(-B // 4), 8)))    # aim for >= 4 steps
    else:
        bb = min(cap, B)                                    # tiny batch: one step
    return max(int(bb), 1)


def _softmax_last(score):
    """Numerically-stable softmax over the last axis (f32 in, f32 out)."""
    m = jnp.max(score, axis=-1, keepdims=True)
    e = jnp.exp(score - m)
    denom = jnp.sum(e, axis=-1, keepdims=True)
    r = pl.reciprocal(denom, approx=True)       # EUP slot (effectively free)
    r = r * (2.0 - denom * r)                   # one Newton step -> ~f32 accuracy
    return e * r


# ----------------------------------------------------------------------------- kernels
def _ta_kernel_packed(x_ref, wsh_ref, wa2h_ref, wa1t_ref, bcast_u_ref,
                      reduce_t_ref, bcast_t_ref, reduce_u_ref, o_ref, *, cdt):
    # x_ref:        (Bb, L) with L = T*U  -- time axis packed into lanes (lane-dense)
    # wsh_ref:      (L, U)  W_score lifted to packed layout (v = h_t @ Ws == x2 @ wsh)
    # wa2h_ref:     (L, U)  W_att[:, U:].T lifted the same way (h_t branch of tanh)
    # wa1t_ref:     (U, U)  W_att[:, :U].T (context branch of tanh)
    # bcast_u_ref:  (U, L)  0/1: replicates a (Bb,U) row across the T lane-groups
    # reduce_t_ref: (L, T)  0/1: sums each U-wide lane group  -> per-time score
    # bcast_t_ref:  (T, L)  0/1: replicates per-time weights across their U lanes
    # reduce_u_ref: (L, U)  0/1: sums over time at fixed unit -> context
    # o_ref:        (Bb, U) attention vector
    def xl():  # read x at each use in compute dtype (no big long-lived copy)
        return x_ref[...].astype(cdt)

    # v = h_t @ W_score  (h_t is folded into the packed matmul via zero-padded rows)
    v = jnp.dot(xl(), wsh_ref[...], preferred_element_type=jnp.float32)           # (Bb,U) f32
    v_lanes = jnp.dot(v.astype(cdt), bcast_u_ref[...],
                      preferred_element_type=jnp.float32).astype(cdt)              # (Bb,L)
    # score[b,t] = sum_u x[b,t,u] * v[b,u]   (lane-dense VPU mul + tiny MXU reduce)
    score = jnp.dot(xl() * v_lanes, reduce_t_ref[...],
                    preferred_element_type=jnp.float32)                             # (Bb,T) f32
    attn = _softmax_last(score)                                                     # (Bb,T) f32
    attn_lanes = jnp.dot(attn.astype(cdt), bcast_t_ref[...],
                         preferred_element_type=jnp.float32).astype(cdt)            # (Bb,L)
    # context[b,u] = sum_t attn[b,t] * x[b,t,u]
    context = jnp.dot(attn_lanes * xl(), reduce_u_ref[...],
                      preferred_element_type=jnp.float32)                           # (Bb,U) f32
    # attention_vector = tanh(context @ Wa1^T + h_t @ Wa2^T)
    pre = (jnp.dot(context.astype(cdt), wa1t_ref[...], preferred_element_type=jnp.float32)
           + jnp.dot(xl(), wa2h_ref[...], preferred_element_type=jnp.float32))
    o_ref[...] = jnp.tanh(pre).astype(o_ref.dtype)


def _ta_kernel_3d(x_ref, ws_ref, wa1t_ref, wa2t_ref, o_ref, *, cdt):
    # x_ref: (Bb, T, U) -- U already lane-dense (U % 128 == 0) or fallback path.
    T = x_ref.shape[1]
    h_t = x_ref[...][:, T - 1, :].astype(cdt)                                       # (Bb,U)
    v = jnp.dot(h_t, ws_ref[...], preferred_element_type=jnp.float32)               # (Bb,U) f32
    # score[b,t] = sum_u x[b,t,u] * v[b,u]  -- elementwise in cdt, accumulate in f32
    score = jnp.sum((x_ref[...].astype(cdt) * v.astype(cdt)[:, None, :])
                    .astype(jnp.float32), axis=-1)                                   # (Bb,T)
    attn = _softmax_last(score)                                                      # (Bb,T) f32
    context = jnp.sum((x_ref[...].astype(cdt) * attn.astype(cdt)[:, :, None])
                      .astype(jnp.float32), axis=1)                                  # (Bb,U) f32
    pre = (jnp.dot(context.astype(cdt), wa1t_ref[...], preferred_element_type=jnp.float32)
           + jnp.dot(h_t, wa2t_ref[...], preferred_element_type=jnp.float32))
    o_ref[...] = jnp.tanh(pre).astype(o_ref.dtype)


# ----------------------------------------------------------------------------- wrapper
def temporal_attention(inputs, w_score, w_att):
    """inputs: (B,T,U); w_score: (U,U); w_att: (U,2U) (PyTorch (out,in) storage).
    Returns (B,T,U): the attention vector repeated over time."""
    B, T, U = inputs.shape
    assert w_score.shape == (U, U)
    assert w_att.shape == (U, 2 * U)

    in_dt = inputs.dtype
    isz = jnp.dtype(in_dt).itemsize
    # Elementwise / MXU-operand dtype: keep the input dtype (bf16 on v6e/v7x),
    # but stay f32 for f32 inputs and on v5e (no bf16 VPU/EUP datapath there).
    cdt = jnp.float32 if (in_dt == jnp.float32 or _is_v5e()) else in_dt
    csz = jnp.dtype(cdt).itemsize

    # One-time weight preprocessing (keeps transposes / concat out of the kernel).
    ws = w_score.astype(cdt)              # (U, U): v = h_t @ ws
    wa1_t = w_att[:, :U].T.astype(cdt)    # (U, U): acts on context
    wa2_t = w_att[:, U:].T.astype(cdt)    # (U, U): acts on h_t

    vmem_limit = _vmem_limit_bytes()

    # Lane-dense packing for small U: fold time into lanes (free reshape) as long
    # as the little 0/1 helper matrices stay small.
    use_packed = (U % 128 != 0) and (T * U <= 4096) and (T <= 256)

    if use_packed:
        L = T * U
        x_arg = inputs.reshape(B, L)                        # pure reshape, no HBM copy
        x_tail = (L,)
        t_of = jnp.arange(L, dtype=jnp.int32) // U          # lane -> time
        u_of = jnp.arange(L, dtype=jnp.int32) % U           # lane -> unit
        reduce_t = (t_of[:, None] == jnp.arange(T, dtype=jnp.int32)[None, :]).astype(cdt)  # (L,T)
        bcast_t = reduce_t.T                                                               # (T,L)
        reduce_u = (u_of[:, None] == jnp.arange(U, dtype=jnp.int32)[None, :]).astype(cdt)  # (L,U)
        bcast_u = reduce_u.T                                                               # (U,L)
        wsh = jnp.zeros((L, U), cdt).at[(T - 1) * U:, :].set(ws)     # h_t @ Ws  == x2 @ wsh
        wa2h = jnp.zeros((L, U), cdt).at[(T - 1) * U:, :].set(wa2_t)  # h_t @ Wa2t == x2 @ wa2h

        kernel = functools.partial(_ta_kernel_packed, cdt=cdt)
        consts = (wsh, wa2h, wa1_t, bcast_u, reduce_t, bcast_t, reduce_u)
        row_in = _round_up(L, 128) * isz
    else:
        x_arg = inputs
        x_tail = (T, U)
        kernel = functools.partial(_ta_kernel_3d, cdt=cdt)
        consts = (ws, wa1_t, wa2_t)
        row_in = _round_up(T, 8) * _round_up(U, 128) * isz

    row_out = _round_up(U, 128) * isz
    const_bytes = sum(_round_up(c.shape[0], 8) * _round_up(c.shape[1], 128) * csz
                      for c in consts)

    def run(single_buffer_weights):
        nbuf = 1 if single_buffer_weights else 2
        bb = _derive_batch_block(B, row_in, row_out, nbuf * const_bytes, vmem_limit)
        grid = (pl.cdiv(B, bb),)
        zeros_tail = (0,) * len(x_tail)

        def x_map(b):
            return (b,) + zeros_tail

        def const_spec(arr):
            cmap = lambda b: (0,) * arr.ndim
            if single_buffer_weights:
                # grid-invariant blocks: a single VMEM buffer is enough
                return pl.BlockSpec(arr.shape, cmap, pipeline_mode=pl.Buffered(1))
            return pl.BlockSpec(arr.shape, cmap)

        return pl.pallas_call(
            kernel,
            out_shape=jax.ShapeDtypeStruct((B, U), in_dt),
            grid_spec=pltpu.PrefetchScalarGridSpec(
                num_scalar_prefetch=0,
                grid=grid,
                in_specs=[pl.BlockSpec((bb,) + x_tail, x_map)]
                         + [const_spec(c) for c in consts],
                out_specs=pl.BlockSpec((bb, U), lambda b: (b, 0)),
            ),
            compiler_params=pltpu.CompilerParams(
                dimension_semantics=("parallel",),
                vmem_limit_bytes=vmem_limit,
            ),
        )(x_arg, *consts)

    try:
        av = run(single_buffer_weights=True)
    except Exception:
        # pipeline_mode=pl.Buffered(1) unsupported on this jax build: fall back to
        # the default double-buffered weight blocks (costs only a few KiB here).
        av = run(single_buffer_weights=False)

    # Time-axis repeat done outside the kernel (free broadcast; avoids T x stores).
    return jnp.broadcast_to(av[:, None, :], (B, T, U))


# ----------------------------------------------------------------------------- reference
def temporal_attention_ref(inputs, w_score, w_att):
    """Plain-JAX replica of the PyTorch forward, for verification."""
    score_first_part = jnp.einsum("btu,vu->btv", inputs, w_score)
    h_t = inputs[:, -1, :]
    score = jnp.einsum("btv,bv->bt", score_first_part, h_t)
    attn = jax.nn.softmax(score, axis=-1)
    context = jnp.einsum("bt,btu->bu", attn, inputs)
    pre = jnp.concatenate([context, h_t], axis=1)
    av = jnp.tanh(jnp.einsum("bc,uc->bu", pre, w_att))
    return jnp.broadcast_to(av[:, None, :], inputs.shape)


if __name__ == "__main__":
    # Case 1: U = 32 (lane-sparse input width -> packed/lane-dense kernel path).
    B, T, U = 8, 8, 32
    k_x, k_ws, k_wa = jax.random.split(jax.random.PRNGKey(0), 3)
    inputs = jax.random.normal(k_x, (B, T, U), dtype=jnp.float32)
    bound_s = 1.0 / (U ** 0.5)
    bound_a = 1.0 / ((2 * U) ** 0.5)
    w_score = jax.random.uniform(k_ws, (U, U), jnp.float32, -bound_s, bound_s)
    w_att = jax.random.uniform(k_wa, (U, 2 * U), jnp.float32, -bound_a, bound_a)

    out = jax.block_until_ready(temporal_attention(inputs, w_score, w_att))
    ref = jax.block_until_ready(temporal_attention_ref(inputs, w_score, w_att))
    assert out.shape == (B, T, U)
    # 5e-4: re-associated score matmul + approx-reciprocal(+Newton) softmax change
    # f32 rounding slightly vs. the straightforward evaluation order.
    assert jnp.max(jnp.abs(out - ref)) < 5e-4, "packed path mismatch vs reference"

    # Case 2: U = 128 (module default width -> lane-dense 3D kernel path).
    B2, T2, U2 = 4, 8, 128
    k_x2, k_ws2, k_wa2 = jax.random.split(jax.random.PRNGKey(1), 3)
    x2 = jax.random.normal(k_x2, (B2, T2, U2), dtype=jnp.float32)
    ws2 = jax.random.uniform(k_ws2, (U2, U2), jnp.float32,
                             -1.0 / U2 ** 0.5, 1.0 / U2 ** 0.5)
    wa2 = jax.random.uniform(k_wa2, (U2, 2 * U2), jnp.float32,
                             -1.0 / (2 * U2) ** 0.5, 1.0 / (2 * U2) ** 0.5)
    out2 = jax.block_until_ready(temporal_attention(x2, ws2, wa2))
    ref2 = jax.block_until_ready(temporal_attention_ref(x2, ws2, wa2))
    assert out2.shape == (B2, T2, U2)
    assert jnp.max(jnp.abs(out2 - ref2)) < 5e-4, "3D path mismatch vs reference"

    print("KERNEL_OK")
</pallas_src>

<mosaic_0001>
module attributes {stable_mosaic.version = 11 : i64} {
  func.func @_ta_kernel_packed(%arg0: i32, %arg1: memref<8x256xf32, #tpu.memory_space<vmem>>, %arg2: memref<256x32xf32, #tpu.memory_space<vmem>>, %arg3: memref<256x32xf32, #tpu.memory_space<vmem>>, %arg4: memref<32x32xf32, #tpu.memory_space<vmem>>, %arg5: memref<32x256xf32, #tpu.memory_space<vmem>>, %arg6: memref<256x8xf32, #tpu.memory_space<vmem>>, %arg7: memref<8x256xf32, #tpu.memory_space<vmem>>, %arg8: memref<256x32xf32, #tpu.memory_space<vmem>>, %arg9: memref<8x32xf32, #tpu.memory_space<vmem>>) attributes {dimension_semantics = [#tpu.dimension_semantics<parallel>], iteration_bounds = array<i64: 1>, scalar_prefetch = 0 : i64, scratch_operands = 0 : i64, tpu.core_type = #tpu.core_type<tc>, window_params = [{transform_indices = @transform_0, window_bounds = array<i64: 8, 256>}, {pipeline_mode = #tpu.pipeline_mode<synchronous>, transform_indices = @transform_1, window_bounds = array<i64: 256, 32>}, {pipeline_mode = #tpu.pipeline_mode<synchronous>, transform_indices = @transform_2, window_bounds = array<i64: 256, 32>}, {pipeline_mode = #tpu.pipeline_mode<synchronous>, transform_indices = @transform_3, window_bounds = array<i64: 32, 32>}, {pipeline_mode = #tpu.pipeline_mode<synchronous>, transform_indices = @transform_4, window_bounds = array<i64: 32, 256>}, {pipeline_mode = #tpu.pipeline_mode<synchronous>, transform_indices = @transform_5, window_bounds = array<i64: 256, 8>}, {pipeline_mode = #tpu.pipeline_mode<synchronous>, transform_indices = @transform_6, window_bounds = array<i64: 8, 256>}, {pipeline_mode = #tpu.pipeline_mode<synchronous>, transform_indices = @transform_7, window_bounds = array<i64: 256, 32>}, {transform_indices = @transform_8, window_bounds = array<i64: 8, 32>}]} {
    %c0 = arith.constant 0 : index
    %c0_0 = arith.constant 0 : index
    %0 = vector.load %arg1[%c0, %c0_0] : memref<8x256xf32, #tpu.memory_space<vmem>>, vector<8x256xf32>
    %c0_1 = arith.constant 0 : index
    %c0_2 = arith.constant 0 : index
    %1 = vector.load %arg2[%c0_1, %c0_2] : memref<256x32xf32, #tpu.memory_space<vmem>>, vector<256x32xf32>
    %cst = arith.constant dense<0.000000e+00> : vector<8x32xf32>
    %2 = tpu.matmul %0, %1, %cst {dimension_numbers = #tpu.dot_dimension_numbers<[1], [0], [0], [1], [0, 0, 1, 1], [], []>} : vector<8x256xf32>, vector<256x32xf32>, vector<8x32xf32> -> vector<8x32xf32>
    %c0_3 = arith.constant 0 : index
    %c0_4 = arith.constant 0 : index
    %3 = vector.load %arg5[%c0_3, %c0_4] : memref<32x256xf32, #tpu.memory_space<vmem>>, vector<32x256xf32>
    %cst_5 = arith.constant dense<0.000000e+00> : vector<8x256xf32>
    %4 = tpu.matmul %2, %3, %cst_5 {dimension_numbers = #tpu.dot_dimension_numbers<[1], [0], [0], [1], [0, 0, 1, 1], [], []>} : vector<8x32xf32>, vector<32x256xf32>, vector<8x256xf32> -> vector<8x256xf32>
    %c0_6 = arith.constant 0 : index
    %c0_7 = arith.constant 0 : index
    %5 = vector.load %arg1[%c0_6, %c0_7] : memref<8x256xf32, #tpu.memory_space<vmem>>, vector<8x256xf32>
    %6 = arith.mulf %5, %4 : vector<8x256xf32>
    %c0_8 = arith.constant 0 : index
    %c0_9 = arith.constant 0 : index
    %7 = vector.load %arg6[%c0_8, %c0_9] : memref<256x8xf32, #tpu.memory_space<vmem>>, vector<256x8xf32>
    %cst_10 = arith.constant dense<0.000000e+00> : vector<8x8xf32>
    %8 = tpu.matmul %6, %7, %cst_10 {dimension_numbers = #tpu.dot_dimension_numbers<[1], [0], [0], [1], [0, 0, 1, 1], [], []>} : vector<8x256xf32>, vector<256x8xf32>, vector<8x8xf32> -> vector<8x8xf32>
    %cst_11 = arith.constant dense<0xFF800000> : vector<8xf32>
    %9 = vector.multi_reduction <maximumf>, %8, %cst_11 [1] : vector<8x8xf32> to vector<8xf32>
    %10 = vector.shape_cast %9 : vector<8xf32> to vector<8x1xf32>
    %11 = vector.broadcast %10 : vector<8x1xf32> to vector<8x8xf32>
    %12 = arith.subf %8, %11 : vector<8x8xf32>
    %13 = math.exp %12 : vector<8x8xf32>
    %cst_12 = arith.constant dense<0.000000e+00> : vector<8xf32>
    %14 = vector.multi_reduction <add>, %13, %cst_12 [1] : vector<8x8xf32> to vector<8xf32>
    %15 = vector.shape_cast %14 : vector<8xf32> to vector<8x1xf32>
    %16 = tpu.reciprocal %15 {approx = true} : vector<8x1xf32> -> vector<8x1xf32>
    %17 = arith.mulf %15, %16 : vector<8x1xf32>
    %cst_13 = arith.constant 2.000000e+00 : f32
    %18 = vector.broadcast %cst_13 : f32 to vector<8x1xf32>
    %19 = arith.subf %18, %17 : vector<8x1xf32>
    %20 = arith.mulf %16, %19 : vector<8x1xf32>
    %21 = vector.broadcast %20 : vector<8x1xf32> to vector<8x8xf32>
    %22 = arith.mulf %13, %21 : vector<8x8xf32>
    %c0_14 = arith.constant 0 : index
    %c0_15 = arith.constant 0 : index
    %23 = vector.load %arg7[%c0_14, %c0_15] : memref<8x256xf32, #tpu.memory_space<vmem>>, vector<8x256xf32>
    %cst_16 = arith.constant dense<0.000000e+00> : vector<8x256xf32>
    %24 = tpu.matmul %22, %23, %cst_16 {dimension_numbers = #tpu.dot_dimension_numbers<[1], [0], [0], [1], [0, 0, 1, 1], [], []>} : vector<8x8xf32>, vector<8x256xf32>, vector<8x256xf32> -> vector<8x256xf32>
    %c0_17 = arith.constant 0 : index
    %c0_18 = arith.constant 0 : index
    %25 = vector.load %arg1[%c0_17, %c0_18] : memref<8x256xf32, #tpu.memory_space<vmem>>, vector<8x256xf32>
    %26 = arith.mulf %24, %25 : vector<8x256xf32>
    %c0_19 = arith.constant 0 : index
    %c0_20 = arith.constant 0 : index
    %27 = vector.load %arg8[%c0_19, %c0_20] : memref<256x32xf32, #tpu.memory_space<vmem>>, vector<256x32xf32>
    %cst_21 = arith.constant dense<0.000000e+00> : vector<8x32xf32>
    %28 = tpu.matmul %26, %27, %cst_21 {dimension_numbers = #tpu.dot_dimension_numbers<[1], [0], [0], [1], [0, 0, 1, 1], [], []>} : vector<8x256xf32>, vector<256x32xf32>, vector<8x32xf32> -> vector<8x32xf32>
    %c0_22 = arith.constant 0 : index
    %c0_23 = arith.constant 0 : index
    %29 = vector.load %arg4[%c0_22, %c0_23] : memref<32x32xf32, #tpu.memory_space<vmem>>, vector<32x32xf32>
    %cst_24 = arith.constant dense<0.000000e+00> : vector<8x32xf32>
    %30 = tpu.matmul %28, %29, %cst_24 {dimension_numbers = #tpu.dot_dimension_numbers<[1], [0], [0], [1], [0, 0, 1, 1], [], []>} : vector<8x32xf32>, vector<32x32xf32>, vector<8x32xf32> -> vector<8x32xf32>
    %c0_25 = arith.constant 0 : index
    %c0_26 = arith.constant 0 : index
    %31 = vector.load %arg1[%c0_25, %c0_26] : memref<8x256xf32, #tpu.memory_space<vmem>>, vector<8x256xf32>
    %c0_27 = arith.constant 0 : index
    %c0_28 = arith.constant 0 : index
    %32 = vector.load %arg3[%c0_27, %c0_28] : memref<256x32xf32, #tpu.memory_space<vmem>>, vector<256x32xf32>
    %cst_29 = arith.constant dense<0.000000e+00> : vector<8x32xf32>
    %33 = tpu.matmul %31, %32, %cst_29 {dimension_numbers = #tpu.dot_dimension_numbers<[1], [0], [0], [1], [0, 0, 1, 1], [], []>} : vector<8x256xf32>, vector<256x32xf32>, vector<8x32xf32> -> vector<8x32xf32>
    %34 = arith.addf %30, %33 : vector<8x32xf32>
    %35 = math.tanh %34 : vector<8x32xf32>
    %c0_30 = arith.constant 0 : index
    %c0_31 = arith.constant 0 : index
    %36 = vector.load %arg9[%c0_30, %c0_31] : memref<8x32xf32, #tpu.memory_space<vmem>>, vector<8x32xf32>
    tpu.vector_store %arg9[%c0_30, %c0_31], %35 {strides = array<i32>} : memref<8x32xf32, #tpu.memory_space<vmem>>, vector<8x32xf32>,
    return
  }
  func.func @transform_0(%arg0: i32) -> (i32, i32) {
    %c0_i32 = arith.constant 0 : i32
    %c0_i32_0 = arith.constant 0 : i32
    return %arg0, %c0_i32 : i32, i32
  }
  func.func @transform_1(%arg0: i32) -> (i32, i32) {
    %c0_i32 = arith.constant 0 : i32
    %c0_i32_0 = arith.constant 0 : i32
    %c0_i32_1 = arith.constant 0 : i32
    return %c0_i32, %c0_i32_0 : i32, i32
  }
  func.func @transform_2(%arg0: i32) -> (i32, i32) {
    %c0_i32 = arith.constant 0 : i32
    %c0_i32_0 = arith.constant 0 : i32
    %c0_i32_1 = arith.constant 0 : i32
    return %c0_i32, %c0_i32_0 : i32, i32
  }
  func.func @transform_3(%arg0: i32) -> (i32, i32) {
    %c0_i32 = arith.constant 0 : i32
    %c0_i32_0 = arith.constant 0 : i32
    %c0_i32_1 = arith.constant 0 : i32
    return %c0_i32, %c0_i32_0 : i32, i32
  }
  func.func @transform_4(%arg0: i32) -> (i32, i32) {
    %c0_i32 = arith.constant 0 : i32
    %c0_i32_0 = arith.constant 0 : i32
    %c0_i32_1 = arith.constant 0 : i32
    return %c0_i32, %c0_i32_0 : i32, i32
  }
  func.func @transform_5(%arg0: i32) -> (i32, i32) {
    %c0_i32 = arith.constant 0 : i32
    %c0_i32_0 = arith.constant 0 : i32
    %c0_i32_1 = arith.constant 0 : i32
    return %c0_i32, %c0_i32_0 : i32, i32
  }
  func.func @transform_6(%arg0: i32) -> (i32, i32) {
    %c0_i32 = arith.constant 0 : i32
    %c0_i32_0 = arith.constant 0 : i32
    %c0_i32_1 = arith.constant 0 : i32
    return %c0_i32, %c0_i32_0 : i32, i32
  }
  func.func @transform_7(%arg0: i32) -> (i32, i32) {
    %c0_i32 = arith.constant 0 : i32
    %c0_i32_0 = arith.constant 0 : i32
    %c0_i32_1 = arith.constant 0 : i32
    return %c0_i32, %c0_i32_0 : i32, i32
  }
  func.func @transform_8(%arg0: i32) -> (i32, i32) {
    %c0_i32 = arith.constant 0 : i32
    %c0_i32_0 = arith.constant 0 : i32
    return %arg0, %c0_i32 : i32, i32
  }
}

module attributes {stable_mosaic.version = 11 : i64} {
  func.func @_ta_kernel_packed(%arg0: i32, %arg1: memref<8x256xf32, #tpu.memory_space<vmem>>, %arg2: memref<256x32xf32, #tpu.memory_space<vmem>>, %arg3: memref<256x32xf32, #tpu.memory_space<vmem>>, %arg4: memref<32x32xf32, #tpu.memory_space<vmem>>, %arg5: memref<32x256xf32, #tpu.memory_space<vmem>>, %arg6: memref<256x8xf32, #tpu.memory_space<vmem>>, %arg7: memref<8x256xf32, #tpu.memory_space<vmem>>, %arg8: memref<256x32xf32, #tpu.memory_space<vmem>>, %arg9: memref<8x32xf32, #tpu.memory_space<vmem>>) attributes {dimension_semantics = [#tpu.dimension_semantics<parallel>], iteration_bounds = array<i64: 1>, scalar_prefetch = 0 : i64, scratch_operands = 0 : i64, tpu.core_type = #tpu.core_type<tc>, window_params = [{transform_indices = @transform_0, window_bounds = array<i64: 8, 256>}, {pipeline_mode = #tpu.pipeline_mode<synchronous>, transform_indices = @transform_1, window_bounds = array<i64: 256, 32>}, {pipeline_mode = #tpu.pipeline_mode<synchronous>, transform_indices = @transform_2, window_bounds = array<i64: 256, 32>}, {pipeline_mode = #tpu.pipeline_mode<synchronous>, transform_indices = @transform_3, window_bounds = array<i64: 32, 32>}, {pipeline_mode = #tpu.pipeline_mode<synchronous>, transform_indices = @transform_4, window_bounds = array<i64: 32, 256>}, {pipeline_mode = #tpu.pipeline_mode<synchronous>, transform_indices = @transform_5, window_bounds = array<i64: 256, 8>}, {pipeline_mode = #tpu.pipeline_mode<synchronous>, transform_indices = @transform_6, window_bounds = array<i64: 8, 256>}, {pipeline_mode = #tpu.pipeline_mode<synchronous>, transform_indices = @transform_7, window_bounds = array<i64: 256, 32>}, {transform_indices = @transform_8, window_bounds = array<i64: 8, 32>}]} {
    %c0 = arith.constant 0 : index
    %c0_0 = arith.constant 0 : index
    %0 = vector.load %arg1[%c0, %c0_0] : memref<8x256xf32, #tpu.memory_space<vmem>>, vector<8x256xf32>
    %c0_1 = arith.constant 0 : index
    %c0_2 = arith.constant 0 : index
    %1 = vector.load %arg2[%c0_1, %c0_2] : memref<256x32xf32, #tpu.memory_space<vmem>>, vector<256x32xf32>
    %cst = arith.constant dense<0.000000e+00> : vector<8x32xf32>
    %2 = tpu.matmul %0, %1, %cst {dimension_numbers = #tpu.dot_dimension_numbers<[1], [0], [0], [1], [0, 0, 1, 1], [], []>} : vector<8x256xf32>, vector<256x32xf32>, vector<8x32xf32> -> vector<8x32xf32>
    %c0_3 = arith.constant 0 : index
    %c0_4 = arith.constant 0 : index
    %3 = vector.load %arg5[%c0_3, %c0_4] : memref<32x256xf32, #tpu.memory_space<vmem>>, vector<32x256xf32>
    %cst_5 = arith.constant dense<0.000000e+00> : vector<8x256xf32>
    %4 = tpu.matmul %2, %3, %cst_5 {dimension_numbers = #tpu.dot_dimension_numbers<[1], [0], [0], [1], [0, 0, 1, 1], [], []>} : vector<8x32xf32>, vector<32x256xf32>, vector<8x256xf32> -> vector<8x256xf32>
    %c0_6 = arith.constant 0 : index
    %c0_7 = arith.constant 0 : index
    %5 = vector.load %arg1[%c0_6, %c0_7] : memref<8x256xf32, #tpu.memory_space<vmem>>, vector<8x256xf32>
    %6 = arith.mulf %5, %4 : vector<8x256xf32>
    %c0_8 = arith.constant 0 : index
    %c0_9 = arith.constant 0 : index
    %7 = vector.load %arg6[%c0_8, %c0_9] : memref<256x8xf32, #tpu.memory_space<vmem>>, vector<256x8xf32>
    %cst_10 = arith.constant dense<0.000000e+00> : vector<8x8xf32>
    %8 = tpu.matmul %6, %7, %cst_10 {dimension_numbers = #tpu.dot_dimension_numbers<[1], [0], [0], [1], [0, 0, 1, 1], [], []>} : vector<8x256xf32>, vector<256x8xf32>, vector<8x8xf32> -> vector<8x8xf32>
    %cst_11 = arith.constant dense<0xFF800000> : vector<8xf32>
    %9 = vector.multi_reduction <maximumf>, %8, %cst_11 [1] : vector<8x8xf32> to vector<8xf32>
    %10 = vector.shape_cast %9 : vector<8xf32> to vector<8x1xf32>
    %11 = vector.broadcast %10 : vector<8x1xf32> to vector<8x8xf32>
    %12 = arith.subf %8, %11 : vector<8x8xf32>
    %13 = math.exp %12 : vector<8x8xf32>
    %cst_12 = arith.constant dense<0.000000e+00> : vector<8xf32>
    %14 = vector.multi_reduction <add>, %13, %cst_12 [1] : vector<8x8xf32> to vector<8xf32>
    %15 = vector.shape_cast %14 : vector<8xf32> to vector<8x1xf32>
    %16 = tpu.reciprocal %15 {approx = true} : vector<8x1xf32> -> vector<8x1xf32>
    %17 = arith.mulf %15, %16 : vector<8x1xf32>
    %cst_13 = arith.constant 2.000000e+00 : f32
    %18 = vector.broadcast %cst_13 : f32 to vector<8x1xf32>
    %19 = arith.subf %18, %17 : vector<8x1xf32>
    %20 = arith.mulf %16, %19 : vector<8x1xf32>
    %21 = vector.broadcast %20 : vector<8x1xf32> to vector<8x8xf32>
    %22 = arith.mulf %13, %21 : vector<8x8xf32>
    %c0_14 = arith.constant 0 : index
    %c0_15 = arith.constant 0 : index
    %23 = vector.load %arg7[%c0_14, %c0_15] : memref<8x256xf32, #tpu.memory_space<vmem>>, vector<8x256xf32>
    %cst_16 = arith.constant dense<0.000000e+00> : vector<8x256xf32>
    %24 = tpu.matmul %22, %23, %cst_16 {dimension_numbers = #tpu.dot_dimension_numbers<[1], [0], [0], [1], [0, 0, 1, 1], [], []>} : vector<8x8xf32>, vector<8x256xf32>, vector<8x256xf32> -> vector<8x256xf32>
    %c0_17 = arith.constant 0 : index
    %c0_18 = arith.constant 0 : index
    %25 = vector.load %arg1[%c0_17, %c0_18] : memref<8x256xf32, #tpu.memory_space<vmem>>, vector<8x256xf32>
    %26 = arith.mulf %24, %25 : vector<8x256xf32>
    %c0_19 = arith.constant 0 : index
    %c0_20 = arith.constant 0 : index
    %27 = vector.load %arg8[%c0_19, %c0_20] : memref<256x32xf32, #tpu.memory_space<vmem>>, vector<256x32xf32>
    %cst_21 = arith.constant dense<0.000000e+00> : vector<8x32xf32>
    %28 = tpu.matmul %26, %27, %cst_21 {dimension_numbers = #tpu.dot_dimension_numbers<[1], [0], [0], [1], [0, 0, 1, 1], [], []>} : vector<8x256xf32>, vector<256x32xf32>, vector<8x32xf32> -> vector<8x32xf32>
    %c0_22 = arith.constant 0 : index
    %c0_23 = arith.constant 0 : index
    %29 = vector.load %arg4[%c0_22, %c0_23] : memref<32x32xf32, #tpu.memory_space<vmem>>, vector<32x32xf32>
    %cst_24 = arith.constant dense<0.000000e+00> : vector<8x32xf32>
    %30 = tpu.matmul %28, %29, %cst_24 {dimension_numbers = #tpu.dot_dimension_numbers<[1], [0], [0], [1], [0, 0, 1, 1], [], []>} : vector<8x32xf32>, vector<32x32xf32>, vector<8x32xf32> -> vector<8x32xf32>
    %c0_25 = arith.constant 0 : index
    %c0_26 = arith.constant 0 : index
    %31 = vector.load %arg1[%c0_25, %c0_26] : memref<8x256xf32, #tpu.memory_space<vmem>>, vector<8x256xf32>
    %c0_27 = arith.constant 0 : index
    %c0_28 = arith.constant 0 : index
    %32 = vector.load %arg3[%c0_27, %c0_28] : memref<256x32xf32, #tpu.memory_space<vmem>>, vector<256x32xf32>
    %cst_29 = arith.constant dense<0.000000e+00> : vector<8x32xf32>
    %33 = tpu.matmul %31, %32, %cst_29 {dimension_numbers = #tpu.dot_dimension_numbers<[1], [0], [0], [1], [0, 0, 1, 1], [], []>} : vector<8x256xf32>, vector<256x32xf32>, vector<8x32xf32> -> vector<8x32xf32>
    %34 = arith.addf %30, %33 : vector<8x32xf32>
    %35 = math.tanh %34 : vector<8x32xf32>
    %c0_30 = arith.constant 0 : index
    %c0_31 = arith.constant 0 : index
    %36 = vector.load %arg9[%c0_30, %c0_31] : memref<8x32xf32, #tpu.memory_space<vmem>>, vector<8x32xf32>
    tpu.vector_store %arg9[%c0_30, %c0_31], %35 {strides = array<i32>} : memref<8x32xf32, #tpu.memory_space<vmem>>, vector<8x32xf32>,
    return
  }
  func.func @transform_0(%arg0: i32) -> (i32, i32) {
    %c0_i32 = arith.constant 0 : i32
    %c0_i32_0 = arith.constant 0 : i32
    return %arg0, %c0_i32 : i32, i32
  }
  func.func @transform_1(%arg0: i32) -> (i32, i32) {
    %c0_i32 = arith.constant 0 : i32
    %c0_i32_0 = arith.constant 0 : i32
    %c0_i32_1 = arith.constant 0 : i32
    return %c0_i32, %c0_i32_0 : i32, i32
  }
  func.func @transform_2(%arg0: i32) -> (i32, i32) {
    %c0_i32 = arith.constant 0 : i32
    %c0_i32_0 = arith.constant 0 : i32
    %c0_i32_1 = arith.constant 0 : i32
    return %c0_i32, %c0_i32_0 : i32, i32
  }
  func.func @transform_3(%arg0: i32) -> (i32, i32) {
    %c0_i32 = arith.constant 0 : i32
    %c0_i32_0 = arith.constant 0 : i32
    %c0_i32_1 = arith.constant 0 : i32
    return %c0_i32, %c0_i32_0 : i32, i32
  }
  func.func @transform_4(%arg0: i32) -> (i32, i32) {
    %c0_i32 = arith.constant 0 : i32
    %c0_i32_0 = arith.constant 0 : i32
    %c0_i32_1 = arith.constant 0 : i32
    return %c0_i32, %c0_i32_0 : i32, i32
  }
  func.func @transform_5(%arg0: i32) -> (i32, i32) {
    %c0_i32 = arith.constant 0 : i32
    %c0_i32_0 = arith.constant 0 : i32
    %c0_i32_1 = arith.constant 0 : i32
    return %c0_i32, %c0_i32_0 : i32, i32
  }
  func.func @transform_6(%arg0: i32) -> (i32, i32) {
    %c0_i32 = arith.constant 0 : i32
    %c0_i32_0 = arith.constant 0 : i32
    %c0_i32_1 = arith.constant 0 : i32
    return %c0_i32, %c0_i32_0 : i32, i32
  }
  func.func @transform_7(%arg0: i32) -> (i32, i32) {
    %c0_i32 = arith.constant 0 : i32
    %c0_i32_0 = arith.constant 0 : i32
    %c0_i32_1 = arith.constant 0 : i32
    return %c0_i32, %c0_i32_0 : i32, i32
  }
  func.func @transform_8(%arg0: i32) -> (i32, i32) {
    %c0_i32 = arith.constant 0 : i32
    %c0_i32_0 = arith.constant 0 : i32
    return %arg0, %c0_i32 : i32, i32
  }
}

</mosaic_0001>

<bundles_post_ra>
// kernel: tpu_custom_call.1
= control target key start
LH: loop header
LB: loop body
LE: loop exit
PB: predicated region body
PF: predicated region fallthrough
CT: control target
= control target key end

     0   :  { %s1024_s0 = inlined_call_operand.vmem [shape: f32[8,256], index: 0, kind: input, shape index: {}]   ;;  %s1025_s1 = inlined_call_operand.vmem [shape: f32[256,32], index: 1, kind: input, shape index: {}]   ;;  %s1026_s2 = inlined_call_operand.vmem [shape: f32[256,32], index: 2, kind: input, shape index: {}]   ;;  %s1027_s3 = inlined_call_operand.vmem [shape: f32[32,32], index: 3, kind: input, shape index: {}]   ;;  %s1028_s4 = inlined_call_operand.vmem [shape: f32[32,256], index: 4, kind: input, shape index: {}]   ;;  %s1029_s5 = inlined_call_operand.vmem [shape: f32[256,8], index: 5, kind: input, shape index: {}]   ;;  %s1030_s6 = inlined_call_operand.vmem [shape: f32[8,256], index: 6, kind: input, shape index: {}]   ;;  %s1031_s7 = inlined_call_operand.vmem [shape: f32[256,32], index: 7, kind: input, shape index: {}]   ;;  %s1032_s8 = inlined_call_operand.hbm [shape: f32[8,32], index: 8, kind: output, shape index: {}]  }
   0x1   :  { %v47_v0 = vld [vmem:[%s1025_s1 + $0x78] sm:$0xff]  ;;  %v46_v2 = vld [vmem:[%s1025_s1 + $0x70] sm:$0xff]  ;;  %v45_v4 = vld [vmem:[%s1025_s1 + $0x68] sm:$0xff] }
   0x2   :  { %v63_v1 = vld [vmem:[%s1025_s1 + $0xf8] sm:$0xff]  ;;  %64 = vmatpush.msra.mxu0 %v47_v0  ;;  %v62_v3 = vld [vmem:[%s1025_s1 + $0xf0] sm:$0xff]  ;;  %v61_v5 = vld [vmem:[%s1025_s1 + $0xe8] sm:$0xff] }
   0x3   :  { %84 = vmatpush.msra.mxu1 %v63_v1  ;;  %v44_v6 = vld [vmem:[%s1025_s1 + $0x60] sm:$0xff]  ;;  %v43_v8 = vld [vmem:[%s1025_s1 + $0x58] sm:$0xff]  ;;  %v42_v10 = vld [vmem:[%s1025_s1 + $0x50] sm:$0xff] }
   0x4   :  { %65 = vmatpush.msra.mxu0 %v46_v2  ;;  %v60_v7 = vld [vmem:[%s1025_s1 + $0xe0] sm:$0xff]  ;;  %v59_v9 = vld [vmem:[%s1025_s1 + $0xd8] sm:$0xff]  ;;  %v58_v11 = vld [vmem:[%s1025_s1 + $0xd0] sm:$0xff] }
   0x5   :  { %85 = vmatpush.msra.mxu1 %v62_v3  ;;  %v41_v12 = vld [vmem:[%s1025_s1 + $0x48] sm:$0xff]  ;;  %v40_v14 = vld [vmem:[%s1025_s1 + $0x40] sm:$0xff]  ;;  %v110_v16 = vld [vmem:[%s1028_s4 + $0x30] sm:$0xff] }
   0x6   :  { %66 = vmatpush.msra.mxu0 %v45_v4  ;;  %v57_v13 = vld [vmem:[%s1025_s1 + $0xc8] sm:$0xff]  ;;  %v56_v15 = vld [vmem:[%s1025_s1 + $0xc0] sm:$0xff]  ;;  %v111_v17 = vld [vmem:[%s1028_s4 + $0x38] sm:$0xff]  ;;  %128 = vmatpush.msra.mxu2 %v110_v16 }
   0x7   :  { %86 = vmatpush.msra.mxu1 %v61_v5  ;;  %148 = vmatpush.msra.mxu3 %v111_v17  ;;  %v108_v18 = vld [vmem:[%s1028_s4 + $0x20] sm:$0xff]  ;;  %v109_v19 = vld [vmem:[%s1028_s4 + $0x28] sm:$0xff] }
   0x8   :  { %67 = vmatpush.msra.mxu0 %v44_v6 }
   0x9   :  { %87 = vmatpush.msra.mxu1 %v60_v7 }
   0xa   :  { %68 = vmatpush.msra.mxu0 %v43_v8 }
   0xb   :  { %88 = vmatpush.msra.mxu1 %v59_v9 }
   0xc   :  { %69 = vmatpush.msra.mxu0 %v42_v10 }
   0xd   :  { %89 = vmatpush.msra.mxu1 %v58_v11 }
   0xe   :  { %13 = vsyncpa [#allocation3], 0  ;;  %70 = vmatpush.msra.mxu0 %v41_v12  ;;  %v39_v20 = vld [vmem:[%s1025_s1 + $0x38] sm:$0xff]  ;;  %129 = vmatpush.msra.mxu2 %v108_v18  ;;  %v38_v22 = vld [vmem:[%s1025_s1 + $0x30] sm:$0xff]  ;;  %vm112_vm0 = vcmask 261120   ;;  %vm230_vm1 = vcmask 64512  }
   0xf   :  { %90 = vmatpush.msra.mxu1 %v57_v13  ;;  %v55_v21 = vld [vmem:[%s1025_s1 + $0xb8] sm:$0xff]  ;;  %149 = vmatpush.msra.mxu3 %v109_v19  ;;  %v54_v23 = vld [vmem:[%s1025_s1 + $0xb0] sm:$0xff]  ;;  %v37_v24 = vld [vmem:[%s1025_s1 + $0x28] sm:$0xff] }
  0x10   :  { %71 = vmatpush.msra.mxu0 %v40_v14  ;;  %v53_v25 = vld [vmem:[%s1025_s1 + $0xa8] sm:$0xff]  ;;  %v36_v26 = vld [vmem:[%s1025_s1 + $0x20] sm:$0xff]  ;;  %v35_v28 = vld [vmem:[%s1025_s1 + $0x18] sm:$0xff] }
  0x11   :  { %91 = vmatpush.msra.mxu1 %v56_v15  ;;  %v52_v27 = vld [vmem:[%s1025_s1 + $0xa0] sm:$0xff]  ;;  %v51_v29 = vld [vmem:[%s1025_s1 + $0x98] sm:$0xff]  ;;  %v34_v30 = vld [vmem:[%s1025_s1 + $0x10] sm:$0xff] }
  0x12   :  { %72 = vmatpush.msra.mxu0 %v39_v20  ;;  %v50_v31 = vld [vmem:[%s1025_s1 + $0x90] sm:$0xff]  ;;  %v33_v32 = vld [vmem:[%s1025_s1 + $0x8] sm:$0xff]  ;;  %v32_v34 = vld [vmem:[%s1025_s1] sm:$0xff] }
  0x13   :  { %92 = vmatpush.msra.mxu1 %v55_v21  ;;  %v49_v33 = vld [vmem:[%s1025_s1 + $0x88] sm:$0xff]  ;;  %v48_v35 = vld [vmem:[%s1025_s1 + $0x80] sm:$0xff]  ;;  %v106_v38 = vld [vmem:[%s1028_s4 + $0x10] sm:$0xff]  ;;  %s472_s1 = sshll.u32 %s1032_s8, 4  ;;  %s473_s1 = int_to_ptr.hbm [resolvable:$true] %s472_s1 }
  0x14   :  { %73 = vmatpush.msra.mxu0 %v38_v22  ;;  %v676_v36 = vld [vmem:[%s1024_s0] sm:$0xff]  ;;  %v681_v37 = vld [vmem:[%s1024_s0 + $0x8] sm:$0xff]  ;;  %v107_v39 = vld [vmem:[%s1028_s4 + $0x18] sm:$0xff]  ;;  %130 = vmatpush.msra.mxu2 %v106_v38 }
  0x15   :  { %93 = vmatpush.msra.mxu1 %v54_v23  ;;  %150 = vmatpush.msra.mxu3 %v107_v39  ;;  %v104_v40 = vld [vmem:[%s1028_s4] sm:$0xff]  ;;  %v105_v41 = vld [vmem:[%s1028_s4 + $0x8] sm:$0xff]  ;;  %v173_v42 = vld [vmem:[%s1029_s5 + $0x78] sm:$0xff] }
  0x16   :  { %74 = vmatpush.msra.mxu0 %v37_v24  ;;  %131 = vmatpush.msra.mxu2 %v104_v40  ;;  %v189_v43 = vld [vmem:[%s1029_s5 + $0xf8] sm:$0xff]  ;;  %v172_v44 = vld [vmem:[%s1029_s5 + $0x70] sm:$0xff]  ;;  %v171_v46 = vld [vmem:[%s1029_s5 + $0x68] sm:$0xff] }
  0x17   :  { %94 = vmatpush.msra.mxu1 %v53_v25  ;;  %151 = vmatpush.msra.mxu3 %v105_v41  ;;  %v188_v45 = vld [vmem:[%s1029_s5 + $0xf0] sm:$0xff]  ;;  %v187_v47 = vld [vmem:[%s1029_s5 + $0xe8] sm:$0xff]  ;;  %v170_v48 = vld [vmem:[%s1029_s5 + $0x60] sm:$0xff] }
  0x18   :  { %75 = vmatpush.msra.mxu0 %v36_v26  ;;  %190 = vmatpush.msrb.mxu2 %v173_v42  ;;  %v186_v49 = vld [vmem:[%s1029_s5 + $0xe0] sm:$0xff]  ;;  %v169_v50 = vld [vmem:[%s1029_s5 + $0x58] sm:$0xff]  ;;  %v168_v52 = vld [vmem:[%s1029_s5 + $0x50] sm:$0xff] }
  0x19   :  { %95 = vmatpush.msra.mxu1 %v52_v27  ;;  %210 = vmatpush.msrb.mxu3 %v189_v43  ;;  %v185_v51 = vld [vmem:[%s1029_s5 + $0xd8] sm:$0xff]  ;;  %v184_v53 = vld [vmem:[%s1029_s5 + $0xd0] sm:$0xff]  ;;  %v167_v54 = vld [vmem:[%s1029_s5 + $0x48] sm:$0xff] }
  0x1a   :  { %76 = vmatpush.msra.mxu0 %v35_v28  ;;  %191 = vmatpush.msrb.mxu2 %v172_v44  ;;  %v183_v55 = vld [vmem:[%s1029_s5 + $0xc8] sm:$0xff]  ;;  %v166_v56 = vld [vmem:[%s1029_s5 + $0x40] sm:$0xff]  ;;  %v165_v58 = vld [vmem:[%s1029_s5 + $0x38] sm:$0xff] }
  0x1b   :  { %96 = vmatpush.msra.mxu1 %v51_v29  ;;  %211 = vmatpush.msrb.mxu3 %v188_v45  ;;  %v182_v57 = vld [vmem:[%s1029_s5 + $0xc0] sm:$0xff]  ;;  %v181_v59 = vld [vmem:[%s1029_s5 + $0xb8] sm:$0xff]  ;;  %v164_v60 = vld [vmem:[%s1029_s5 + $0x30] sm:$0xff] }
  0x1c   :  { %77 = vmatpush.msra.mxu0 %v34_v30  ;;  %192 = vmatpush.msrb.mxu2 %v171_v46  ;;  %v180_v61 = vld [vmem:[%s1029_s5 + $0xb0] sm:$0xff]  ;;  %v163_v62 = vld [vmem:[%s1029_s5 + $0x28] sm:$0xff]  ;;  %v162_v0 = vld [vmem:[%s1029_s5 + $0x20] sm:$0xff] }
  0x1d   :  { %97 = vmatpush.msra.mxu1 %v50_v31  ;;  %212 = vmatpush.msrb.mxu3 %v187_v47  ;;  %v179_v63 = vld [vmem:[%s1029_s5 + $0xa8] sm:$0xff]  ;;  %v178_v1 = vld [vmem:[%s1029_s5 + $0xa0] sm:$0xff]  ;;  %v161_v2 = vld [vmem:[%s1029_s5 + $0x18] sm:$0xff] }
  0x1e   :  { %78 = vmatpush.msra.mxu0 %v33_v32  ;;  %193 = vmatpush.msrb.mxu2 %v170_v48  ;;  %v177_v3 = vld [vmem:[%s1029_s5 + $0x98] sm:$0xff]  ;;  %v160_v4 = vld [vmem:[%s1029_s5 + $0x10] sm:$0xff]  ;;  %v159_v9 = vld [vmem:[%s1029_s5 + $0x8] sm:$0xff] }
  0x1f   :  { %98 = vmatpush.msra.mxu1 %v49_v33  ;;  %213 = vmatpush.msrb.mxu3 %v186_v49  ;;  %v176_v5 = vld [vmem:[%s1029_s5 + $0x90] sm:$0xff]  ;;  %v175_v10 = vld [vmem:[%s1029_s5 + $0x88] sm:$0xff]  ;;  %v158_v11 = vld [vmem:[%s1029_s5] sm:$0xff] }
  0x20   :  { %79 = vmatpush.msra.mxu0 %v32_v34  ;;  %194 = vmatpush.msrb.mxu2 %v169_v50  ;;  %v174_v12 = vld [vmem:[%s1029_s5 + $0x80] sm:$0xff]  ;;  %v246_v27 = vld [vmem:[%s1030_s6 + $0x8] sm:$0xff]  ;;  %v307_v28 = vld [vmem:[%s1031_s7 + $0x78] sm:$0xff] }
  0x21   :  { %99 = vmatpush.msra.mxu1 %v48_v35  ;;  %80 = vmatmul.f32.vlgmr.msra.gmra.mxu0 %v676_v36  ;;  %v245_v26 = vld [vmem:[%s1030_s6] sm:$0xff]  ;;  %v323_v29 = vld [vmem:[%s1031_s7 + $0xf8] sm:$0xff]  ;;  %v306_v30 = vld [vmem:[%s1031_s7 + $0x70] sm:$0xff] }
  0x22   :  { %100 = vmatmul.f32.vlgmr.msra.gmra.mxu1 %v681_v37  ;;  %214 = vmatpush.msrb.mxu3 %v185_v51  ;;  %v322_v31 = vld [vmem:[%s1031_s7 + $0xf0] sm:$0xff]  ;;  %v305_v32 = vld [vmem:[%s1031_s7 + $0x68] sm:$0xff]  ;;  %v304_v34 = vld [vmem:[%s1031_s7 + $0x60] sm:$0xff] }
  0x23   :  { %195 = vmatpush.msrb.mxu2 %v168_v52  ;;  %265 = vmatpush.msrb.mxu0 %v245_v26  ;;  %v321_v33 = vld [vmem:[%s1031_s7 + $0xe8] sm:$0xff]  ;;  %v320_v35 = vld [vmem:[%s1031_s7 + $0xe0] sm:$0xff]  ;;  %v303_v38 = vld [vmem:[%s1031_s7 + $0x58] sm:$0xff] }
  0x24   :  { %215 = vmatpush.msrb.mxu3 %v184_v53  ;;  %285 = vmatpush.msrb.mxu1 %v246_v27  ;;  %v319_v39 = vld [vmem:[%s1031_s7 + $0xd8] sm:$0xff]  ;;  %v302_v40 = vld [vmem:[%s1031_s7 + $0x50] sm:$0xff]  ;;  %v301_v42 = vld [vmem:[%s1031_s7 + $0x48] sm:$0xff] }
  0x25   :  { %196 = vmatpush.msrb.mxu2 %v167_v54  ;;  %324 = vmatpush.msra.mxu0 %v307_v28  ;;  %v318_v41 = vld [vmem:[%s1031_s7 + $0xd0] sm:$0xff]  ;;  %v317_v43 = vld [vmem:[%s1031_s7 + $0xc8] sm:$0xff]  ;;  %v300_v44 = vld [vmem:[%s1031_s7 + $0x40] sm:$0xff] }
  0x26   :  { %216 = vmatpush.msrb.mxu3 %v183_v55  ;;  %344 = vmatpush.msra.mxu1 %v323_v29  ;;  %v316_v45 = vld [vmem:[%s1031_s7 + $0xc0] sm:$0xff]  ;;  %v299_v46 = vld [vmem:[%s1031_s7 + $0x38] sm:$0xff]  ;;  %v298_v49 = vld [vmem:[%s1031_s7 + $0x30] sm:$0xff] }
  0x27   :  { %197 = vmatpush.msrb.mxu2 %v166_v56  ;;  %325 = vmatpush.msra.mxu0 %v306_v30  ;;  %v315_v47 = vld [vmem:[%s1031_s7 + $0xb8] sm:$0xff]  ;;  %v314_v50 = vld [vmem:[%s1031_s7 + $0xb0] sm:$0xff]  ;;  %v297_v51 = vld [vmem:[%s1031_s7 + $0x28] sm:$0xff] }
  0x28   :  { %217 = vmatpush.msrb.mxu3 %v182_v57  ;;  %345 = vmatpush.msra.mxu1 %v322_v31  ;;  %v313_v52 = vld [vmem:[%s1031_s7 + $0xa8] sm:$0xff]  ;;  %v296_v53 = vld [vmem:[%s1031_s7 + $0x20] sm:$0xff]  ;;  %v295_v55 = vld [vmem:[%s1031_s7 + $0x18] sm:$0xff] }
  0x29   :  { %198 = vmatpush.msrb.mxu2 %v165_v58  ;;  %326 = vmatpush.msra.mxu0 %v305_v32  ;;  %v312_v54 = vld [vmem:[%s1031_s7 + $0xa0] sm:$0xff]  ;;  %v311_v56 = vld [vmem:[%s1031_s7 + $0x98] sm:$0xff]  ;;  %v390_v26 = vld [vmem:[%s1026_s2 + $0xb0] sm:$0xff] }
  0x2a   :  { %218 = vmatpush.msrb.mxu3 %v181_v59  ;;  %346 = vmatpush.msra.mxu1 %v321_v33  ;;  %v294_v59 = vld [vmem:[%s1031_s7 + $0x10] sm:$0xff]  ;;  %v373_v27 = vld [vmem:[%s1026_s2 + $0x28] sm:$0xff]  ;;  %v372_v29 = vld [vmem:[%s1026_s2 + $0x20] sm:$0xff] }
  0x2b   :  { %199 = vmatpush.msrb.mxu2 %v164_v60  ;;  %327 = vmatpush.msra.mxu0 %v304_v34  ;;  %v310_v60 = vld [vmem:[%s1031_s7 + $0x90] sm:$0xff]  ;;  %v389_v28 = vld [vmem:[%s1026_s2 + $0xa8] sm:$0xff]  ;;  %v388_v30 = vld [vmem:[%s1026_s2 + $0xa0] sm:$0xff] }
  0x2c   :  { %219 = vmatpush.msrb.mxu3 %v180_v61  ;;  %347 = vmatpush.msra.mxu1 %v320_v35  ;;  %v371_v31 = vld [vmem:[%s1026_s2 + $0x18] sm:$0xff]  ;;  %v370_v33 = vld [vmem:[%s1026_s2 + $0x10] sm:$0xff]  ;;  %v369_v35 = vld [vmem:[%s1026_s2 + $0x8] sm:$0xff] }
  0x2d   :  { %200 = vmatpush.msrb.mxu2 %v163_v62  ;;  %328 = vmatpush.msra.mxu0 %v303_v38  ;;  %v387_v32 = vld [vmem:[%s1026_s2 + $0x98] sm:$0xff]  ;;  %v386_v34 = vld [vmem:[%s1026_s2 + $0x90] sm:$0xff]  ;;  %v385_v38 = vld [vmem:[%s1026_s2 + $0x88] sm:$0xff] }
  0x2e   :  { %220 = vmatpush.msrb.mxu3 %v179_v63  ;;  %348 = vmatpush.msra.mxu1 %v319_v39  ;;  %v368_v39 = vld [vmem:[%s1026_s2] sm:$0xff] }
  0x2f   :  { %201 = vmatpush.msrb.mxu2 %v162_v0  ;;  %329 = vmatpush.msra.mxu0 %v302_v40  ;;  %v293_v0 = vld [vmem:[%s1031_s7 + $0x8] sm:$0xff]  ;;  %v384_v40 = vld [vmem:[%s1026_s2 + $0x80] sm:$0xff] }
  0x30   :  { %221 = vmatpush.msrb.mxu3 %v178_v1  ;;  %349 = vmatpush.msra.mxu1 %v318_v41  ;;  %v309_v1 = vld [vmem:[%s1031_s7 + $0x88] sm:$0xff] }
  0x31   :  { %202 = vmatpush.msrb.mxu2 %v161_v2  ;;  %330 = vmatpush.msra.mxu0 %v301_v42  ;;  %v292_v2 = vld [vmem:[%s1031_s7] sm:$0xff] }
  0x32   :  { %222 = vmatpush.msrb.mxu3 %v177_v3  ;;  %350 = vmatpush.msra.mxu1 %v317_v43  ;;  %v308_v3 = vld [vmem:[%s1031_s7 + $0x80] sm:$0xff] }
  0x33   :  { %203 = vmatpush.msrb.mxu2 %v160_v4  ;;  %331 = vmatpush.msra.mxu0 %v300_v44  ;;  %v383_v4 = vld [vmem:[%s1026_s2 + $0x78] sm:$0xff] }
  0x34   :  { %223 = vmatpush.msrb.mxu3 %v176_v5  ;;  %351 = vmatpush.msra.mxu1 %v316_v45  ;;  %v399_v5 = vld [vmem:[%s1026_s2 + $0xf8] sm:$0xff]  ;;  %v364_v45 = vld [vmem:[%s1027_s3] sm:$0xff] }
  0x35   :  { %204 = vmatpush.msrb.mxu2 %v159_v9  ;;  %332 = vmatpush.msra.mxu0 %v299_v46  ;;  %v397_v9 = vld [vmem:[%s1026_s2 + $0xe8] sm:$0xff] }
  0x36   :  { %224 = vmatpush.msrb.mxu3 %v175_v10  ;;  %352 = vmatpush.msra.mxu1 %v315_v47  ;;  %v380_v10 = vld [vmem:[%s1026_s2 + $0x60] sm:$0xff] }
  0x37   :  { %205 = vmatpush.msrb.mxu2 %v158_v11  ;;  %333 = vmatpush.msra.mxu0 %v298_v49  ;;  %v396_v11 = vld [vmem:[%s1026_s2 + $0xe0] sm:$0xff] }
  0x38   :  { %225 = vmatpush.msrb.mxu3 %v174_v12  ;;  %353 = vmatpush.msra.mxu1 %v314_v50  ;;  %v379_v12 = vld [vmem:[%s1026_s2 + $0x58] sm:$0xff] }
  0x39   :  { %334 = vmatpush.msra.mxu0 %v297_v51 }
  0x3a   :  { %354 = vmatpush.msra.mxu1 %v313_v52 }
  0x3b   :  { %335 = vmatpush.msra.mxu0 %v296_v53 }
  0x3c   :  { %355 = vmatpush.msra.mxu1 %v312_v54 }
  0x3d   :  { %336 = vmatpush.msra.mxu0 %v295_v55 }
  0x3e   :  { %356 = vmatpush.msra.mxu1 %v311_v56 }
  0x3f   :  { %337 = vmatpush.msra.mxu0 %v294_v59 }
  0x40   :  { %357 = vmatpush.msra.mxu1 %v310_v60 }
  0x41   :  { %338 = vmatpush.msra.mxu0 %v293_v0 }
  0x42   :  { %358 = vmatpush.msra.mxu1 %v309_v1 }
  0x43   :  { %339 = vmatpush.msra.mxu0 %v292_v2 }
  0x44   :  { %359 = vmatpush.msra.mxu1 %v308_v3 }
  0x9e   :  { %v81_v6 = vpop.f32.mrf.mxu0 }
  0x9f   :  { %v101_v7 = vpop.f32.mrf.mxu1 }
  0xa0   :  { %v102_v8 = vadd.f32 %v101_v7, %v81_v6  ;;  %v382_v6 = vld [vmem:[%s1026_s2 + $0x70] sm:$0xff] }
  0xa1   :  { %v398_v7 = vld [vmem:[%s1026_s2 + $0xf0] sm:$0xff] }
  0xa2   :  { %481 = vmatmul.msk.f32.vlgmr.msra.gmra.mxu2 %vm112_vm0, %v102_v8  ;;  %482 = vmatmul.msk.f32.vlgmr.msra.gmra.mxu3 %vm112_vm0, %v102_v8  ;;  %v381_v8 = vld [vmem:[%s1026_s2 + $0x68] sm:$0xff] }
  0xa3   :  { %400 = vmatpush.msra.mxu2 %v383_v4  ;;  %420 = vmatpush.msra.mxu3 %v399_v5 }
  0xa5   :  { %401 = vmatpush.msra.mxu2 %v382_v6  ;;  %421 = vmatpush.msra.mxu3 %v398_v7 }
  0xa7   :  { %402 = vmatpush.msra.mxu2 %v381_v8  ;;  %422 = vmatpush.msra.mxu3 %v397_v9 }
  0xa9   :  { %403 = vmatpush.msra.mxu2 %v380_v10  ;;  %423 = vmatpush.msra.mxu3 %v396_v11 }
  0xab   :  { %404 = vmatpush.msra.mxu2 %v379_v12 }
 0x125   :  { %v133_v13 = vpop.f32.mrf.mxu2  ;;  %v153_v14 = vpop.f32.mrf.mxu3 }
 0x126   :  { %v156_v15 = vmul.f32 %v133_v13, %v676_v36  ;;  %v157_v16 = vmul.f32 %v153_v14, %v681_v37  ;;  %v395_v13 = vld [vmem:[%s1026_s2 + $0xd8] sm:$0xff]  ;;  %v378_v14 = vld [vmem:[%s1026_s2 + $0x50] sm:$0xff] }
 0x127   :  { %424 = vmatpush.msra.mxu3 %v395_v13  ;;  %405 = vmatpush.msra.mxu2 %v378_v14 }
 0x128   :  { %206 = vmatmul.f32.vlgmr.msrb.gmra.mxu2 %v156_v15  ;;  %226 = vmatmul.f32.vlgmr.msrb.gmra.mxu3 %v157_v16  ;;  %v394_v15 = vld [vmem:[%s1026_s2 + $0xd0] sm:$0xff]  ;;  %v377_v16 = vld [vmem:[%s1026_s2 + $0x48] sm:$0xff] }
 0x129   :  { %425 = vmatpush.msra.mxu3 %v394_v15  ;;  %406 = vmatpush.msra.mxu2 %v377_v16 }
 0x1ab   :  { %v207_v17 = vpop.f32.mrf.mxu2  ;;  %v227_v18 = vpop.f32.mrf.mxu3 }
 0x1ac   :  { %v228_v19 = vadd.f32 %v227_v18, %v207_v17  ;;  %v393_v17 = vld [vmem:[%s1026_s2 + $0xc8] sm:$0xff]  ;;  %v367_v18 = vld [vmem:[%s1027_s3 + $0x18] sm:$0xff] }
 0x1ad   :  { %426 = vmatpush.msra.mxu3 %v393_v17 }
 0x1ae   :  { %v231_v20 = vsel %vm230_vm1, %v228_v19, -inf }
 0x1af   :  { %232 = vmax.xlane.f32.xlu0 %v231_v20  ;;  %v376_v20 = vld [vmem:[%s1026_s2 + $0x40] sm:$0xff] }
 0x1b0   :  { %407 = vmatpush.msra.mxu2 %v376_v20 }
 0x222   :  { %v233_v21 = vpop.xlane.xlu0 %232 }
 0x223   :  { %v234_v22 = vsub.f32 %v228_v19, %v233_v21  ;;  %v366_v19 = vld [vmem:[%s1027_s3 + $0x10] sm:$0xff]  ;;  %v392_v21 = vld [vmem:[%s1026_s2 + $0xc0] sm:$0xff] }
 0x224   :  { %427 = vmatpush.msra.mxu3 %v392_v21 }
 0x225   :  { %v235_v23 = vmul.f32 1.442695, %v234_v22  ;;  %v365_v22 = vld [vmem:[%s1027_s3 + $0x8] sm:$0xff] }
 0x227   :  { %487 = vpow2.f32 %v235_v23  ;;  %v375_v23 = vld [vmem:[%s1026_s2 + $0x38] sm:$0xff] }
 0x228   :  { %408 = vmatpush.msra.mxu2 %v375_v23 }
 0x22d   :  { %v798_v24 = vpop.eup %487 }
 0x22e   :  { %v237_v25 = vsel %vm230_vm1, %v798_v24, 0.0 }
 0x22f   :  { %238 = vadd.xlane.f32.xlu0 %v237_v25  ;;  %v374_v25 = vld [vmem:[%s1026_s2 + $0x30] sm:$0xff] }
 0x230   :  { %409 = vmatpush.msra.mxu2 %v374_v25 }
 0x232   :  { %410 = vmatpush.msra.mxu2 %v373_v27 }
 0x234   :  { %411 = vmatpush.msra.mxu2 %v372_v29 }
 0x236   :  { %412 = vmatpush.msra.mxu2 %v371_v31 }
 0x238   :  { %413 = vmatpush.msra.mxu2 %v370_v33 }
 0x23a   :  { %414 = vmatpush.msra.mxu2 %v369_v35 }
 0x23c   :  { %415 = vmatpush.msra.mxu2 %v368_v39 }
 0x23d   :  { %416 = vmatmul.f32.vlgmr.msra.gmra.mxu2 %v676_v36 }
 0x2a2   :  { %v239_v48 = vpop.xlane.xlu0 %238 }
 0x2a3   :  { %489 = vrcp.f32 %v239_v48 }
 0x2a9   :  { %v490_v57 = vpop.eup %489 }
 0x2aa   :  { %v241_v58 = vmul.f32 %v490_v57, %v239_v48 }
 0x2ac   :  { %v242_v61 = vsub.f32 2.0, %v241_v58 }
 0x2ae   :  { %v243_v62 = vmul.f32 %v490_v57, %v242_v61 }
 0x2b0   :  { %v244_v63 = vmul.f32 %v798_v24, %v243_v62  ;;  %v391_v24 = vld [vmem:[%s1026_s2 + $0xb8] sm:$0xff]  ;;  %s519_s2 = smov [#allocation2]  }
 0x2b1   :  { %428 = vmatpush.msra.mxu3 %v391_v24  ;;  %s470_s13 = sshll.u32 %s519_s2, 4  ;;  %s471_s13 = int_to_ptr.vmem [resolvable:$true] %s470_s13 }
 0x2b2   :  { %483 = vmatmul.msk.f32.vlgmr.msrb.gmra.mxu0 %vm230_vm1, %v244_v63  ;;  %484 = vmatmul.msk.f32.vlgmr.msrb.gmra.mxu1 %vm230_vm1, %v244_v63 }
 0x2b3   :  { %455 = vmatpush.msrb.mxu0 %v367_v18  ;;  %429 = vmatpush.msra.mxu3 %v390_v26 }
 0x2b5   :  { %456 = vmatpush.msrb.mxu0 %v366_v19  ;;  %430 = vmatpush.msra.mxu3 %v389_v28 }
 0x2b7   :  { %457 = vmatpush.msrb.mxu0 %v365_v22  ;;  %431 = vmatpush.msra.mxu3 %v388_v30 }
 0x2b9   :  { %432 = vmatpush.msra.mxu3 %v387_v32  ;;  %458 = vmatpush.msrb.mxu0 %v364_v45 }
 0x2bb   :  { %433 = vmatpush.msra.mxu3 %v386_v34 }
 0x2bd   :  { %434 = vmatpush.msra.mxu3 %v385_v38 }
 0x2bf   :  { %435 = vmatpush.msra.mxu3 %v384_v40 }
 0x2c0   :  { %436 = vmatmul.f32.vlgmr.msra.gmra.mxu3 %v681_v37  ;;  %v417_v49 = vpop.f32.mrf.mxu2 }
 0x32f   :  { %v267_v41 = vpop.f32.mrf.mxu0  ;;  %v287_v42 = vpop.f32.mrf.mxu1 }
 0x330   :  { %v290_v43 = vmul.f32 %v267_v41, %v676_v36  ;;  %v291_v44 = vmul.f32 %v287_v42, %v681_v37 }
 0x332   :  { %340 = vmatmul.f32.vlgmr.msra.gmra.mxu0 %v290_v43  ;;  %360 = vmatmul.f32.vlgmr.msra.gmra.mxu1 %v291_v44 }
 0x343   :  { %v437_v50 = vpop.f32.mrf.mxu3 }
 0x344   :  { %v438_v51 = vadd.f32 %v437_v50, %v417_v49 }
 0x3af   :  { %v341_v46 = vpop.f32.mrf.mxu0  ;;  %v361_v47 = vpop.f32.mrf.mxu1 }
 0x3b0   :  { %v362_v48 = vadd.f32 %v361_v47, %v341_v46 }
 0x3b2   :  { %485 = vmatmul.msk.f32.vlgmr.msrb.gmra.mxu0 %vm112_vm0, %v362_v48 }
 0x42f   :  { %v460_v52 = vpop.f32.mrf.mxu0 }
 0x430   :  { %v461_v53 = vadd.f32 %v460_v52, %v438_v51 }
 0x432   :  { %491 = vtanh.f32 %v461_v53 }
 0x438   :  { %v492_v36 = vpop.eup %491 }
 0x439   :  { %464 = vst.msk [vmem:[#allocation2] sm:$0xff] %vm112_vm0, %v492_v36 }
 0x43a   :  { %475 = dma.vmem_to_hbm [thread:$0]  %s471_s13, 128, %s473_s1, [#allocation3]  }
 0x43b   :  { %517 = dma.done.wait [#allocation3], 128  }
 0x43c   :  { %518 = vsyncadd [#allocation3], 4294967168 }
 0x43d   :  { %480 = vsyncpa [#allocation3], 1 }

// kernel: tpu_custom_call.1
= control target key start
LH: loop header
LB: loop body
LE: loop exit
PB: predicated region body
PF: predicated region fallthrough
CT: control target
= control target key end

     0   :  { %s1024_s0 = inlined_call_operand.vmem [shape: f32[8,256], index: 0, kind: input, shape index: {}]   ;;  %s1025_s1 = inlined_call_operand.vmem [shape: f32[256,32], index: 1, kind: input, shape index: {}]   ;;  %s1026_s2 = inlined_call_operand.vmem [shape: f32[256,32], index: 2, kind: input, shape index: {}]   ;;  %s1027_s3 = inlined_call_operand.vmem [shape: f32[32,32], index: 3, kind: input, shape index: {}]   ;;  %s1028_s4 = inlined_call_operand.vmem [shape: f32[32,256], index: 4, kind: input, shape index: {}]   ;;  %s1029_s5 = inlined_call_operand.vmem [shape: f32[256,8], index: 5, kind: input, shape index: {}]   ;;  %s1030_s6 = inlined_call_operand.vmem [shape: f32[8,256], index: 6, kind: input, shape index: {}]   ;;  %s1031_s7 = inlined_call_operand.vmem [shape: f32[256,32], index: 7, kind: input, shape index: {}]   ;;  %s1032_s8 = inlined_call_operand.hbm [shape: f32[8,32], index: 8, kind: output, shape index: {}]  }
   0x1   :  { %v47_v0 = vld [vmem:[%s1025_s1 + $0x78] sm:$0xff]  ;;  %v46_v2 = vld [vmem:[%s1025_s1 + $0x70] sm:$0xff]  ;;  %v45_v4 = vld [vmem:[%s1025_s1 + $0x68] sm:$0xff] }
   0x2   :  { %v63_v1 = vld [vmem:[%s1025_s1 + $0xf8] sm:$0xff]  ;;  %64 = vmatpush.msra.mxu0 %v47_v0  ;;  %v62_v3 = vld [vmem:[%s1025_s1 + $0xf0] sm:$0xff]  ;;  %v61_v5 = vld [vmem:[%s1025_s1 + $0xe8] sm:$0xff] }
   0x3   :  { %84 = vmatpush.msra.mxu1 %v63_v1  ;;  %v44_v6 = vld [vmem:[%s1025_s1 + $0x60] sm:$0xff]  ;;  %v43_v8 = vld [vmem:[%s1025_s1 + $0x58] sm:$0xff]  ;;  %v42_v10 = vld [vmem:[%s1025_s1 + $0x50] sm:$0xff] }
   0x4   :  { %65 = vmatpush.msra.mxu0 %v46_v2  ;;  %v60_v7 = vld [vmem:[%s1025_s1 + $0xe0] sm:$0xff]  ;;  %v59_v9 = vld [vmem:[%s1025_s1 + $0xd8] sm:$0xff]  ;;  %v58_v11 = vld [vmem:[%s1025_s1 + $0xd0] sm:$0xff] }
   0x5   :  { %85 = vmatpush.msra.mxu1 %v62_v3  ;;  %v41_v12 = vld [vmem:[%s1025_s1 + $0x48] sm:$0xff]  ;;  %v40_v14 = vld [vmem:[%s1025_s1 + $0x40] sm:$0xff]  ;;  %v110_v16 = vld [vmem:[%s1028_s4 + $0x30] sm:$0xff] }
   0x6   :  { %66 = vmatpush.msra.mxu0 %v45_v4  ;;  %v57_v13 = vld [vmem:[%s1025_s1 + $0xc8] sm:$0xff]  ;;  %v56_v15 = vld [vmem:[%s1025_s1 + $0xc0] sm:$0xff]  ;;  %v111_v17 = vld [vmem:[%s1028_s4 + $0x38] sm:$0xff]  ;;  %128 = vmatpush.msra.mxu2 %v110_v16 }
   0x7   :  { %86 = vmatpush.msra.mxu1 %v61_v5  ;;  %148 = vmatpush.msra.mxu3 %v111_v17  ;;  %v108_v18 = vld [vmem:[%s1028_s4 + $0x20] sm:$0xff]  ;;  %v109_v19 = vld [vmem:[%s1028_s4 + $0x28] sm:$0xff] }
   0x8   :  { %67 = vmatpush.msra.mxu0 %v44_v6 }
   0x9   :  { %87 = vmatpush.msra.mxu1 %v60_v7 }
   0xa   :  { %68 = vmatpush.msra.mxu0 %v43_v8 }
   0xb   :  { %88 = vmatpush.msra.mxu1 %v59_v9 }
   0xc   :  { %69 = vmatpush.msra.mxu0 %v42_v10 }
   0xd   :  { %89 = vmatpush.msra.mxu1 %v58_v11 }
   0xe   :  { %13 = vsyncpa [#allocation3], 0  ;;  %70 = vmatpush.msra.mxu0 %v41_v12  ;;  %v39_v20 = vld [vmem:[%s1025_s1 + $0x38] sm:$0xff]  ;;  %129 = vmatpush.msra.mxu2 %v108_v18  ;;  %v38_v22 = vld [vmem:[%s1025_s1 + $0x30] sm:$0xff]  ;;  %vm112_vm0 = vcmask 261120   ;;  %vm230_vm1 = vcmask 64512  }
   0xf   :  { %90 = vmatpush.msra.mxu1 %v57_v13  ;;  %v55_v21 = vld [vmem:[%s1025_s1 + $0xb8] sm:$0xff]  ;;  %149 = vmatpush.msra.mxu3 %v109_v19  ;;  %v54_v23 = vld [vmem:[%s1025_s1 + $0xb0] sm:$0xff]  ;;  %v37_v24 = vld [vmem:[%s1025_s1 + $0x28] sm:$0xff] }
  0x10   :  { %71 = vmatpush.msra.mxu0 %v40_v14  ;;  %v53_v25 = vld [vmem:[%s1025_s1 + $0xa8] sm:$0xff]  ;;  %v36_v26 = vld [vmem:[%s1025_s1 + $0x20] sm:$0xff]  ;;  %v35_v28 = vld [vmem:[%s1025_s1 + $0x18] sm:$0xff] }
  0x11   :  { %91 = vmatpush.msra.mxu1 %v56_v15  ;;  %v52_v27 = vld [vmem:[%s1025_s1 + $0xa0] sm:$0xff]  ;;  %v51_v29 = vld [vmem:[%s1025_s1 + $0x98] sm:$0xff]  ;;  %v34_v30 = vld [vmem:[%s1025_s1 + $0x10] sm:$0xff] }
  0x12   :  { %72 = vmatpush.msra.mxu0 %v39_v20  ;;  %v50_v31 = vld [vmem:[%s1025_s1 + $0x90] sm:$0xff]  ;;  %v33_v32 = vld [vmem:[%s1025_s1 + $0x8] sm:$0xff]  ;;  %v32_v34 = vld [vmem:[%s1025_s1] sm:$0xff] }
  0x13   :  { %92 = vmatpush.msra.mxu1 %v55_v21  ;;  %v49_v33 = vld [vmem:[%s1025_s1 + $0x88] sm:$0xff]  ;;  %v48_v35 = vld [vmem:[%s1025_s1 + $0x80] sm:$0xff]  ;;  %v106_v38 = vld [vmem:[%s1028_s4 + $0x10] sm:$0xff]  ;;  %s472_s1 = sshll.u32 %s1032_s8, 4  ;;  %s473_s1 = int_to_ptr.hbm [resolvable:$true] %s472_s1 }
  0x14   :  { %73 = vmatpush.msra.mxu0 %v38_v22  ;;  %v676_v36 = vld [vmem:[%s1024_s0] sm:$0xff]  ;;  %v681_v37 = vld [vmem:[%s1024_s0 + $0x8] sm:$0xff]  ;;  %v107_v39 = vld [vmem:[%s1028_s4 + $0x18] sm:$0xff]  ;;  %130 = vmatpush.msra.mxu2 %v106_v38 }
  0x15   :  { %93 = vmatpush.msra.mxu1 %v54_v23  ;;  %150 = vmatpush.msra.mxu3 %v107_v39  ;;  %v104_v40 = vld [vmem:[%s1028_s4] sm:$0xff]  ;;  %v105_v41 = vld [vmem:[%s1028_s4 + $0x8] sm:$0xff]  ;;  %v173_v42 = vld [vmem:[%s1029_s5 + $0x78] sm:$0xff] }
  0x16   :  { %74 = vmatpush.msra.mxu0 %v37_v24  ;;  %131 = vmatpush.msra.mxu2 %v104_v40  ;;  %v189_v43 = vld [vmem:[%s1029_s5 + $0xf8] sm:$0xff]  ;;  %v172_v44 = vld [vmem:[%s1029_s5 + $0x70] sm:$0xff]  ;;  %v171_v46 = vld [vmem:[%s1029_s5 + $0x68] sm:$0xff] }
  0x17   :  { %94 = vmatpush.msra.mxu1 %v53_v25  ;;  %151 = vmatpush.msra.mxu3 %v105_v41  ;;  %v188_v45 = vld [vmem:[%s1029_s5 + $0xf0] sm:$0xff]  ;;  %v187_v47 = vld [vmem:[%s1029_s5 + $0xe8] sm:$0xff]  ;;  %v170_v48 = vld [vmem:[%s1029_s5 + $0x60] sm:$0xff] }
  0x18   :  { %75 = vmatpush.msra.mxu0 %v36_v26  ;;  %190 = vmatpush.msrb.mxu2 %v173_v42  ;;  %v186_v49 = vld [vmem:[%s1029_s5 + $0xe0] sm:$0xff]  ;;  %v169_v50 = vld [vmem:[%s1029_s5 + $0x58] sm:$0xff]  ;;  %v168_v52 = vld [vmem:[%s1029_s5 + $0x50] sm:$0xff] }
  0x19   :  { %95 = vmatpush.msra.mxu1 %v52_v27  ;;  %210 = vmatpush.msrb.mxu3 %v189_v43  ;;  %v185_v51 = vld [vmem:[%s1029_s5 + $0xd8] sm:$0xff]  ;;  %v184_v53 = vld [vmem:[%s1029_s5 + $0xd0] sm:$0xff]  ;;  %v167_v54 = vld [vmem:[%s1029_s5 + $0x48] sm:$0xff] }
  0x1a   :  { %76 = vmatpush.msra.mxu0 %v35_v28  ;;  %191 = vmatpush.msrb.mxu2 %v172_v44  ;;  %v183_v55 = vld [vmem:[%s1029_s5 + $0xc8] sm:$0xff]  ;;  %v166_v56 = vld [vmem:[%s1029_s5 + $0x40] sm:$0xff]  ;;  %v165_v58 = vld [vmem:[%s1029_s5 + $0x38] sm:$0xff] }
  0x1b   :  { %96 = vmatpush.msra.mxu1 %v51_v29  ;;  %211 = vmatpush.msrb.mxu3 %v188_v45  ;;  %v182_v57 = vld [vmem:[%s1029_s5 + $0xc0] sm:$0xff]  ;;  %v181_v59 = vld [vmem:[%s1029_s5 + $0xb8] sm:$0xff]  ;;  %v164_v60 = vld [vmem:[%s1029_s5 + $0x30] sm:$0xff] }
  0x1c   :  { %77 = vmatpush.msra.mxu0 %v34_v30  ;;  %192 = vmatpush.msrb.mxu2 %v171_v46  ;;  %v180_v61 = vld [vmem:[%s1029_s5 + $0xb0] sm:$0xff]  ;;  %v163_v62 = vld [vmem:[%s1029_s5 + $0x28] sm:$0xff]  ;;  %v162_v0 = vld [vmem:[%s1029_s5 + $0x20] sm:$0xff] }
  0x1d   :  { %97 = vmatpush.msra.mxu1 %v50_v31  ;;  %212 = vmatpush.msrb.mxu3 %v187_v47  ;;  %v179_v63 = vld [vmem:[%s1029_s5 + $0xa8] sm:$0xff]  ;;  %v178_v1 = vld [vmem:[%s1029_s5 + $0xa0] sm:$0xff]  ;;  %v161_v2 = vld [vmem:[%s1029_s5 + $0x18] sm:$0xff] }
  0x1e   :  { %78 = vmatpush.msra.mxu0 %v33_v32  ;;  %193 = vmatpush.msrb.mxu2 %v170_v48  ;;  %v177_v3 = vld [vmem:[%s1029_s5 + $0x98] sm:$0xff]  ;;  %v160_v4 = vld [vmem:[%s1029_s5 + $0x10] sm:$0xff]  ;;  %v159_v9 = vld [vmem:[%s1029_s5 + $0x8] sm:$0xff] }
  0x1f   :  { %98 = vmatpush.msra.mxu1 %v49_v33  ;;  %213 = vmatpush.msrb.mxu3 %v186_v49  ;;  %v176_v5 = vld [vmem:[%s1029_s5 + $0x90] sm:$0xff]  ;;  %v175_v10 = vld [vmem:[%s1029_s5 + $0x88] sm:$0xff]  ;;  %v158_v11 = vld [vmem:[%s1029_s5] sm:$0xff] }
  0x20   :  { %79 = vmatpush.msra.mxu0 %v32_v34  ;;  %194 = vmatpush.msrb.mxu2 %v169_v50  ;;  %v174_v12 = vld [vmem:[%s1029_s5 + $0x80] sm:$0xff]  ;;  %v246_v27 = vld [vmem:[%s1030_s6 + $0x8] sm:$0xff]  ;;  %v307_v28 = vld [vmem:[%s1031_s7 + $0x78] sm:$0xff] }
  0x21   :  { %99 = vmatpush.msra.mxu1 %v48_v35  ;;  %80 = vmatmul.f32.vlgmr.msra.gmra.mxu0 %v676_v36  ;;  %v245_v26 = vld [vmem:[%s1030_s6] sm:$0xff]  ;;  %v323_v29 = vld [vmem:[%s1031_s7 + $0xf8] sm:$0xff]  ;;  %v306_v30 = vld [vmem:[%s1031_s7 + $0x70] sm:$0xff] }
  0x22   :  { %100 = vmatmul.f32.vlgmr.msra.gmra.mxu1 %v681_v37  ;;  %214 = vmatpush.msrb.mxu3 %v185_v51  ;;  %v322_v31 = vld [vmem:[%s1031_s7 + $0xf0] sm:$0xff]  ;;  %v305_v32 = vld [vmem:[%s1031_s7 + $0x68] sm:$0xff]  ;;  %v304_v34 = vld [vmem:[%s1031_s7 + $0x60] sm:$0xff] }
  0x23   :  { %195 = vmatpush.msrb.mxu2 %v168_v52  ;;  %265 = vmatpush.msrb.mxu0 %v245_v26  ;;  %v321_v33 = vld [vmem:[%s1031_s7 + $0xe8] sm:$0xff]  ;;  %v320_v35 = vld [vmem:[%s1031_s7 + $0xe0] sm:$0xff]  ;;  %v303_v38 = vld [vmem:[%s1031_s7 + $0x58] sm:$0xff] }
  0x24   :  { %215 = vmatpush.msrb.mxu3 %v184_v53  ;;  %285 = vmatpush.msrb.mxu1 %v246_v27  ;;  %v319_v39 = vld [vmem:[%s1031_s7 + $0xd8] sm:$0xff]  ;;  %v302_v40 = vld [vmem:[%s1031_s7 + $0x50] sm:$0xff]  ;;  %v301_v42 = vld [vmem:[%s1031_s7 + $0x48] sm:$0xff] }
  0x25   :  { %196 = vmatpush.msrb.mxu2 %v167_v54  ;;  %324 = vmatpush.msra.mxu0 %v307_v28  ;;  %v318_v41 = vld [vmem:[%s1031_s7 + $0xd0] sm:$0xff]  ;;  %v317_v43 = vld [vmem:[%s1031_s7 + $0xc8] sm:$0xff]  ;;  %v300_v44 = vld [vmem:[%s1031_s7 + $0x40] sm:$0xff] }
  0x26   :  { %216 = vmatpush.msrb.mxu3 %v183_v55  ;;  %344 = vmatpush.msra.mxu1 %v323_v29  ;;  %v316_v45 = vld [vmem:[%s1031_s7 + $0xc0] sm:$0xff]  ;;  %v299_v46 = vld [vmem:[%s1031_s7 + $0x38] sm:$0xff]  ;;  %v298_v49 = vld [vmem:[%s1031_s7 + $0x30] sm:$0xff] }
  0x27   :  { %197 = vmatpush.msrb.mxu2 %v166_v56  ;;  %325 = vmatpush.msra.mxu0 %v306_v30  ;;  %v315_v47 = vld [vmem:[%s1031_s7 + $0xb8] sm:$0xff]  ;;  %v314_v50 = vld [vmem:[%s1031_s7 + $0xb0] sm:$0xff]  ;;  %v297_v51 = vld [vmem:[%s1031_s7 + $0x28] sm:$0xff] }
  0x28   :  { %217 = vmatpush.msrb.mxu3 %v182_v57  ;;  %345 = vmatpush.msra.mxu1 %v322_v31  ;;  %v313_v52 = vld [vmem:[%s1031_s7 + $0xa8] sm:$0xff]  ;;  %v296_v53 = vld [vmem:[%s1031_s7 + $0x20] sm:$0xff]  ;;  %v295_v55 = vld [vmem:[%s1031_s7 + $0x18] sm:$0xff] }
  0x29   :  { %198 = vmatpush.msrb.mxu2 %v165_v58  ;;  %326 = vmatpush.msra.mxu0 %v305_v32  ;;  %v312_v54 = vld [vmem:[%s1031_s7 + $0xa0] sm:$0xff]  ;;  %v311_v56 = vld [vmem:[%s1031_s7 + $0x98] sm:$0xff]  ;;  %v390_v26 = vld [vmem:[%s1026_s2 + $0xb0] sm:$0xff] }
  0x2a   :  { %218 = vmatpush.msrb.mxu3 %v181_v59  ;;  %346 = vmatpush.msra.mxu1 %v321_v33  ;;  %v294_v59 = vld [vmem:[%s1031_s7 + $0x10] sm:$0xff]  ;;  %v373_v27 = vld [vmem:[%s1026_s2 + $0x28] sm:$0xff]  ;;  %v372_v29 = vld [vmem:[%s1026_s2 + $0x20] sm:$0xff] }
  0x2b   :  { %199 = vmatpush.msrb.mxu2 %v164_v60  ;;  %327 = vmatpush.msra.mxu0 %v304_v34  ;;  %v310_v60 = vld [vmem:[%s1031_s7 + $0x90] sm:$0xff]  ;;  %v389_v28 = vld [vmem:[%s1026_s2 + $0xa8] sm:$0xff]  ;;  %v388_v30 = vld [vmem:[%s1026_s2 + $0xa0] sm:$0xff] }
  0x2c   :  { %219 = vmatpush.msrb.mxu3 %v180_v61  ;;  %347 = vmatpush.msra.mxu1 %v320_v35  ;;  %v371_v31 = vld [vmem:[%s1026_s2 + $0x18] sm:$0xff]  ;;  %v370_v33 = vld [vmem:[%s1026_s2 + $0x10] sm:$0xff]  ;;  %v369_v35 = vld [vmem:[%s1026_s2 + $0x8] sm:$0xff] }
  0x2d   :  { %200 = vmatpush.msrb.mxu2 %v163_v62  ;;  %328 = vmatpush.msra.mxu0 %v303_v38  ;;  %v387_v32 = vld [vmem:[%s1026_s2 + $0x98] sm:$0xff]  ;;  %v386_v34 = vld [vmem:[%s1026_s2 + $0x90] sm:$0xff]  ;;  %v385_v38 = vld [vmem:[%s1026_s2 + $0x88] sm:$0xff] }
  0x2e   :  { %220 = vmatpush.msrb.mxu3 %v179_v63  ;;  %348 = vmatpush.msra.mxu1 %v319_v39  ;;  %v368_v39 = vld [vmem:[%s1026_s2] sm:$0xff] }
  0x2f   :  { %201 = vmatpush.msrb.mxu2 %v162_v0  ;;  %329 = vmatpush.msra.mxu0 %v302_v40  ;;  %v293_v0 = vld [vmem:[%s1031_s7 + $0x8] sm:$0xff]  ;;  %v384_v40 = vld [vmem:[%s1026_s2 + $0x80] sm:$0xff] }
  0x30   :  { %221 = vmatpush.msrb.mxu3 %v178_v1  ;;  %349 = vmatpush.msra.mxu1 %v318_v41  ;;  %v309_v1 = vld [vmem:[%s1031_s7 + $0x88] sm:$0xff] }
  0x31   :  { %202 = vmatpush.msrb.mxu2 %v161_v2  ;;  %330 = vmatpush.msra.mxu0 %v301_v42  ;;  %v292_v2 = vld [vmem:[%s1031_s7] sm:$0xff] }
  0x32   :  { %222 = vmatpush.msrb.mxu3 %v177_v3  ;;  %350 = vmatpush.msra.mxu1 %v317_v43  ;;  %v308_v3 = vld [vmem:[%s1031_s7 + $0x80] sm:$0xff] }
  0x33   :  { %203 = vmatpush.msrb.mxu2 %v160_v4  ;;  %331 = vmatpush.msra.mxu0 %v300_v44  ;;  %v383_v4 = vld [vmem:[%s1026_s2 + $0x78] sm:$0xff] }
  0x34   :  { %223 = vmatpush.msrb.mxu3 %v176_v5  ;;  %351 = vmatpush.msra.mxu1 %v316_v45  ;;  %v399_v5 = vld [vmem:[%s1026_s2 + $0xf8] sm:$0xff]  ;;  %v364_v45 = vld [vmem:[%s1027_s3] sm:$0xff] }
  0x35   :  { %204 = vmatpush.msrb.mxu2 %v159_v9  ;;  %332 = vmatpush.msra.mxu0 %v299_v46  ;;  %v397_v9 = vld [vmem:[%s1026_s2 + $0xe8] sm:$0xff] }
  0x36   :  { %224 = vmatpush.msrb.mxu3 %v175_v10  ;;  %352 = vmatpush.msra.mxu1 %v315_v47  ;;  %v380_v10 = vld [vmem:[%s1026_s2 + $0x60] sm:$0xff] }
  0x37   :  { %205 = vmatpush.msrb.mxu2 %v158_v11  ;;  %333 = vmatpush.msra.mxu0 %v298_v49  ;;  %v396_v11 = vld [vmem:[%s1026_s2 + $0xe0] sm:$0xff] }
  0x38   :  { %225 = vmatpush.msrb.mxu3 %v174_v12  ;;  %353 = vmatpush.msra.mxu1 %v314_v50  ;;  %v379_v12 = vld [vmem:[%s1026_s2 + $0x58] sm:$0xff] }
  0x39   :  { %334 = vmatpush.msra.mxu0 %v297_v51 }
  0x3a   :  { %354 = vmatpush.msra.mxu1 %v313_v52 }
  0x3b   :  { %335 = vmatpush.msra.mxu0 %v296_v53 }
  0x3c   :  { %355 = vmatpush.msra.mxu1 %v312_v54 }
  0x3d   :  { %336 = vmatpush.msra.mxu0 %v295_v55 }
  0x3e   :  { %356 = vmatpush.msra.mxu1 %v311_v56 }
  0x3f   :  { %337 = vmatpush.msra.mxu0 %v294_v59 }
  0x40   :  { %357 = vmatpush.msra.mxu1 %v310_v60 }
  0x41   :  { %338 = vmatpush.msra.mxu0 %v293_v0 }
  0x42   :  { %358 = vmatpush.msra.mxu1 %v309_v1 }
  0x43   :  { %339 = vmatpush.msra.mxu0 %v292_v2 }
  0x44   :  { %359 = vmatpush.msra.mxu1 %v308_v3 }
  0x9e   :  { %v81_v6 = vpop.f32.mrf.mxu0 }
  0x9f   :  { %v101_v7 = vpop.f32.mrf.mxu1 }
  0xa0   :  { %v102_v8 = vadd.f32 %v101_v7, %v81_v6  ;;  %v382_v6 = vld [vmem:[%s1026_s2 + $0x70] sm:$0xff] }
  0xa1   :  { %v398_v7 = vld [vmem:[%s1026_s2 + $0xf0] sm:$0xff] }
  0xa2   :  { %481 = vmatmul.msk.f32.vlgmr.msra.gmra.mxu2 %vm112_vm0, %v102_v8  ;;  %482 = vmatmul.msk.f32.vlgmr.msra.gmra.mxu3 %vm112_vm0, %v102_v8  ;;  %v381_v8 = vld [vmem:[%s1026_s2 + $0x68] sm:$0xff] }
  0xa3   :  { %400 = vmatpush.msra.mxu2 %v383_v4  ;;  %420 = vmatpush.msra.mxu3 %v399_v5 }
  0xa5   :  { %401 = vmatpush.msra.mxu2 %v382_v6  ;;  %421 = vmatpush.msra.mxu3 %v398_v7 }
  0xa7   :  { %402 = vmatpush.msra.mxu2 %v381_v8  ;;  %422 = vmatpush.msra.mxu3 %v397_v9 }
  0xa9   :  { %403 = vmatpush.msra.mxu2 %v380_v10  ;;  %423 = vmatpush.msra.mxu3 %v396_v11 }
  0xab   :  { %404 = vmatpush.msra.mxu2 %v379_v12 }
 0x125   :  { %v133_v13 = vpop.f32.mrf.mxu2  ;;  %v153_v14 = vpop.f32.mrf.mxu3 }
 0x126   :  { %v156_v15 = vmul.f32 %v133_v13, %v676_v36  ;;  %v157_v16 = vmul.f32 %v153_v14, %v681_v37  ;;  %v395_v13 = vld [vmem:[%s1026_s2 + $0xd8] sm:$0xff]  ;;  %v378_v14 = vld [vmem:[%s1026_s2 + $0x50] sm:$0xff] }
 0x127   :  { %424 = vmatpush.msra.mxu3 %v395_v13  ;;  %405 = vmatpush.msra.mxu2 %v378_v14 }
 0x128   :  { %206 = vmatmul.f32.vlgmr.msrb.gmra.mxu2 %v156_v15  ;;  %226 = vmatmul.f32.vlgmr.msrb.gmra.mxu3 %v157_v16  ;;  %v394_v15 = vld [vmem:[%s1026_s2 + $0xd0] sm:$0xff]  ;;  %v377_v16 = vld [vmem:[%s1026_s2 + $0x48] sm:$0xff] }
 0x129   :  { %425 = vmatpush.msra.mxu3 %v394_v15  ;;  %406 = vmatpush.msra.mxu2 %v377_v16 }
 0x1ab   :  { %v207_v17 = vpop.f32.mrf.mxu2  ;;  %v227_v18 = vpop.f32.mrf.mxu3 }
 0x1ac   :  { %v228_v19 = vadd.f32 %v227_v18, %v207_v17  ;;  %v393_v17 = vld [vmem:[%s1026_s2 + $0xc8] sm:$0xff]  ;;  %v367_v18 = vld [vmem:[%s1027_s3 + $0x18] sm:$0xff] }
 0x1ad   :  { %426 = vmatpush.msra.mxu3 %v393_v17 }
 0x1ae   :  { %v231_v20 = vsel %vm230_vm1, %v228_v19, -inf }
 0x1af   :  { %232 = vmax.xlane.f32.xlu0 %v231_v20  ;;  %v376_v20 = vld [vmem:[%s1026_s2 + $0x40] sm:$0xff] }
 0x1b0   :  { %407 = vmatpush.msra.mxu2 %v376_v20 }
 0x222   :  { %v233_v21 = vpop.xlane.xlu0 %232 }
 0x223   :  { %v234_v22 = vsub.f32 %v228_v19, %v233_v21  ;;  %v366_v19 = vld [vmem:[%s1027_s3 + $0x10] sm:$0xff]  ;;  %v392_v21 = vld [vmem:[%s1026_s2 + $0xc0] sm:$0xff] }
 0x224   :  { %427 = vmatpush.msra.mxu3 %v392_v21 }
 0x225   :  { %v235_v23 = vmul.f32 1.442695, %v234_v22  ;;  %v365_v22 = vld [vmem:[%s1027_s3 + $0x8] sm:$0xff] }
 0x227   :  { %487 = vpow2.f32 %v235_v23  ;;  %v375_v23 = vld [vmem:[%s1026_s2 + $0x38] sm:$0xff] }
 0x228   :  { %408 = vmatpush.msra.mxu2 %v375_v23 }
 0x22d   :  { %v798_v24 = vpop.eup %487 }
 0x22e   :  { %v237_v25 = vsel %vm230_vm1, %v798_v24, 0.0 }
 0x22f   :  { %238 = vadd.xlane.f32.xlu0 %v237_v25  ;;  %v374_v25 = vld [vmem:[%s1026_s2 + $0x30] sm:$0xff] }
 0x230   :  { %409 = vmatpush.msra.mxu2 %v374_v25 }
 0x232   :  { %410 = vmatpush.msra.mxu2 %v373_v27 }
 0x234   :  { %411 = vmatpush.msra.mxu2 %v372_v29 }
 0x236   :  { %412 = vmatpush.msra.mxu2 %v371_v31 }
 0x238   :  { %413 = vmatpush.msra.mxu2 %v370_v33 }
 0x23a   :  { %414 = vmatpush.msra.mxu2 %v369_v35 }
 0x23c   :  { %415 = vmatpush.msra.mxu2 %v368_v39 }
 0x23d   :  { %416 = vmatmul.f32.vlgmr.msra.gmra.mxu2 %v676_v36 }
 0x2a2   :  { %v239_v48 = vpop.xlane.xlu0 %238 }
 0x2a3   :  { %489 = vrcp.f32 %v239_v48 }
 0x2a9   :  { %v490_v57 = vpop.eup %489 }
 0x2aa   :  { %v241_v58 = vmul.f32 %v490_v57, %v239_v48 }
 0x2ac   :  { %v242_v61 = vsub.f32 2.0, %v241_v58 }
 0x2ae   :  { %v243_v62 = vmul.f32 %v490_v57, %v242_v61 }
 0x2b0   :  { %v244_v63 = vmul.f32 %v798_v24, %v243_v62  ;;  %v391_v24 = vld [vmem:[%s1026_s2 + $0xb8] sm:$0xff]  ;;  %s519_s2 = smov [#allocation2]  }
 0x2b1   :  { %428 = vmatpush.msra.mxu3 %v391_v24  ;;  %s470_s13 = sshll.u32 %s519_s2, 4  ;;  %s471_s13 = int_to_ptr.vmem [resolvable:$true] %s470_s13 }
 0x2b2   :  { %483 = vmatmul.msk.f32.vlgmr.msrb.gmra.mxu0 %vm230_vm1, %v244_v63  ;;  %484 = vmatmul.msk.f32.vlgmr.msrb.gmra.mxu1 %vm230_vm1, %v244_v63 }
 0x2b3   :  { %455 = vmatpush.msrb.mxu0 %v367_v18  ;;  %429 = vmatpush.msra.mxu3 %v390_v26 }
 0x2b5   :  { %456 = vmatpush.msrb.mxu0 %v366_v19  ;;  %430 = vmatpush.msra.mxu3 %v389_v28 }
 0x2b7   :  { %457 = vmatpush.msrb.mxu0 %v365_v22  ;;  %431 = vmatpush.msra.mxu3 %v388_v30 }
 0x2b9   :  { %432 = vmatpush.msra.mxu3 %v387_v32  ;;  %458 = vmatpush.msrb.mxu0 %v364_v45 }
 0x2bb   :  { %433 = vmatpush.msra.mxu3 %v386_v34 }
 0x2bd   :  { %434 = vmatpush.msra.mxu3 %v385_v38 }
 0x2bf   :  { %435 = vmatpush.msra.mxu3 %v384_v40 }
 0x2c0   :  { %436 = vmatmul.f32.vlgmr.msra.gmra.mxu3 %v681_v37  ;;  %v417_v49 = vpop.f32.mrf.mxu2 }
 0x32f   :  { %v267_v41 = vpop.f32.mrf.mxu0  ;;  %v287_v42 = vpop.f32.mrf.mxu1 }
 0x330   :  { %v290_v43 = vmul.f32 %v267_v41, %v676_v36  ;;  %v291_v44 = vmul.f32 %v287_v42, %v681_v37 }
 0x332   :  { %340 = vmatmul.f32.vlgmr.msra.gmra.mxu0 %v290_v43  ;;  %360 = vmatmul.f32.vlgmr.msra.gmra.mxu1 %v291_v44 }
 0x343   :  { %v437_v50 = vpop.f32.mrf.mxu3 }
 0x344   :  { %v438_v51 = vadd.f32 %v437_v50, %v417_v49 }
 0x3af   :  { %v341_v46 = vpop.f32.mrf.mxu0  ;;  %v361_v47 = vpop.f32.mrf.mxu1 }
 0x3b0   :  { %v362_v48 = vadd.f32 %v361_v47, %v341_v46 }
 0x3b2   :  { %485 = vmatmul.msk.f32.vlgmr.msrb.gmra.mxu0 %vm112_vm0, %v362_v48 }
 0x42f   :  { %v460_v52 = vpop.f32.mrf.mxu0 }
 0x430   :  { %v461_v53 = vadd.f32 %v460_v52, %v438_v51 }
 0x432   :  { %491 = vtanh.f32 %v461_v53 }
 0x438   :  { %v492_v36 = vpop.eup %491 }
 0x439   :  { %464 = vst.msk [vmem:[#allocation2] sm:$0xff] %vm112_vm0, %v492_v36 }
 0x43a   :  { %475 = dma.vmem_to_hbm [thread:$0]  %s471_s13, 128, %s473_s1, [#allocation3]  }
 0x43b   :  { %517 = dma.done.wait [#allocation3], 128  }
 0x43c   :  { %518 = vsyncadd [#allocation3], 4294967168 }
 0x43d   :  { %480 = vsyncpa [#allocation3], 1 }

</bundles_post_ra>
